<compile_context>
chip_gen: v7x
topology: tpu7x:2x2x1
jax: 0.10.0
libtpu: 0.0.40
codegen_flags: <defaults>
</compile_context>

<pallas_src>
import jax
import jax.numpy as jnp
from jax import lax
from jax.experimental import pallas as pl
from jax.experimental.pallas import tpu as pltpu


def _round_up(x, m):
    return (x + m - 1) // m * m


_TAPS = tuple((dy, dx) for dy in range(3) for dx in range(3))  # dy-major (HWIO order)


def _detector_kernel(x_ref, wb_ref, bb_ref, wh_ref, bh_ref, out_ref, patch_ref):
    # x_ref    : (1, H+2, W+2, Cin) f32  -- zero-padded NHWC tile for one image
    # wb_ref   : (9*Cin, Cb)        bf16 -- 3x3 conv weight, taps flattened (im2col order)
    # bb_ref   : (1, Cb)            f32
    # wh_ref   : (Cb, Cpad)         bf16 -- neck folded into concat(cls, reg) head, zero-padded
    # bh_ref   : (1, Cpad)          f32
    # out_ref  : (1, Cpad, H*W)     f32  -- lane-dense, channels-major (== NCHW layout)
    # patch_ref: (H*W, 9*Cin)       f32  -- im2col scratch (VMEM)
    H = x_ref.shape[1] - 2
    W = x_ref.shape[2] - 2
    cin = x_ref.shape[3]

    # ---- backbone: 3x3 same-pad conv via in-VMEM im2col + one K=9*Cin MXU matmul ----
    for t, (dy, dx) in enumerate(_TAPS):
        patch_ref[:, t * cin:(t + 1) * cin] = (
            x_ref[0, dy:dy + H, dx:dx + W, :].reshape(H * W, cin))
    h = jnp.dot(patch_ref[...].astype(jnp.bfloat16), wb_ref[...],
                preferred_element_type=jnp.float32)           # (H*W, Cb) f32 accum
    h = jnp.maximum(h + bb_ref[...], 0.0)                     # bias + ReLU in f32

    # ---- neck folded into heads; single fused head matmul (cls ++ reg, padded) ----
    out = jnp.dot(h.astype(jnp.bfloat16), wh_ref[...],
                  preferred_element_type=jnp.float32) + bh_ref[...]   # (H*W, Cpad)

    # ---- lane-dense store: channels on sublanes, H*W on lanes (tile-aligned transpose) ----
    out_ref[...] = jnp.transpose(out)[None, :, :]


def single_stage_detector(x_nchw, params):
    """Forward pass. x_nchw: (N, Cin, H, W) float32. Returns (cls, reg) in NCHW."""
    wb, bb, wn, bn, wc, bc, wr, br = params
    N, Cin, H, W = x_nchw.shape
    Cb = wb.shape[3]
    Ccls = wc.shape[1]
    Creg = wr.shape[1]
    Ctot = Ccls + Creg
    # Pad head channels to a multiple of 128: keeps the in-kernel result transpose
    # tile-aligned; costs nothing on the MXU (N is padded to MXU width anyway).
    Cpad = _round_up(Ctot, 128)

    # ---- fold the linear neck into the (concatenated) heads: pure wrapper algebra ----
    w_cat = jnp.concatenate([wc, wr], axis=1)              # (Cn, Ctot)
    b_cat = jnp.concatenate([bc, br], axis=0)              # (Ctot,)
    wh = wn @ w_cat                                        # (Cb, Ctot)
    bh = bn @ w_cat + b_cat                                # (Ctot,)
    wh = jnp.pad(wh, ((0, 0), (0, Cpad - Ctot))).astype(jnp.bfloat16)
    bh = jnp.pad(bh, ((0, Cpad - Ctot),)).reshape(1, Cpad)

    wb_flat = wb.reshape(9 * Cin, Cb).astype(jnp.bfloat16)  # im2col weight layout
    bb2 = bb.reshape(1, Cb)

    # NCHW -> NHWC + 1px halo pad (single fused XLA copy of a tiny input).
    # TODO(synk): at real detector sizes, handle the halo in-kernel (edge masking /
    # Element-offset index_map) and add a spatial grid axis to avoid this HBM copy
    # and fit v7x's 64 MiB VMEM.
    x = jnp.transpose(x_nchw, (0, 2, 3, 1))
    x_pad = jnp.pad(x, ((0, 0), (1, 1), (1, 1), (0, 0)))

    full = lambda *shape: pl.BlockSpec(shape, lambda b: (0,) * len(shape))

    out = pl.pallas_call(
        _detector_kernel,
        out_shape=jax.ShapeDtypeStruct((N, Cpad, H * W), jnp.float32),
        grid_spec=pltpu.PrefetchScalarGridSpec(
            num_scalar_prefetch=0,
            grid=(N,),
            in_specs=[
                pl.BlockSpec((1, H + 2, W + 2, Cin), lambda b: (b, 0, 0, 0)),
                full(9 * Cin, Cb),
                full(1, Cb),
                full(Cb, Cpad),
                full(1, Cpad),
            ],
            out_specs=pl.BlockSpec((1, Cpad, H * W), lambda b: (b, 0, 0)),
            scratch_shapes=[pltpu.VMEM((H * W, 9 * Cin), jnp.float32)],
        ),
        compiler_params=pltpu.CompilerParams(
            dimension_semantics=("parallel",),
            vmem_limit_bytes=32 * 1024 * 1024,
        ),
    )(x_pad, wb_flat, bb2, wh, bh)

    # Output is already channels-major and lane-dense: slice channels and reshape
    # the contiguous H*W axis back to (H, W) -- no transpose needed.
    cls = out[:, :Ccls, :].reshape(N, Ccls, H, W)
    reg = out[:, Ccls:Ctot, :].reshape(N, Creg, H, W)
    return cls, reg


def _reference(x_nchw, params):
    """Pure-JAX f32 reference (NHWC convs) for correctness checking."""
    wb, bb, wn, bn, wc, bc, wr, br = params
    x = jnp.transpose(x_nchw, (0, 2, 3, 1))
    h = lax.conv_general_dilated(
        x, wb, window_strides=(1, 1), padding="SAME",
        dimension_numbers=("NHWC", "HWIO", "NHWC")) + bb
    h = jnp.maximum(h, 0.0)
    n = jnp.einsum("nhwc,cd->nhwd", h, wn) + bn
    cls = jnp.einsum("nhwc,cd->nhwd", n, wc) + bc
    reg = jnp.einsum("nhwc,cd->nhwd", n, wr) + br
    return (jnp.transpose(cls, (0, 3, 1, 2)),
            jnp.transpose(reg, (0, 3, 1, 2)))


def init_params(key, cin, cb, cn, num_classes, num_anchors):
    ks = jax.random.split(key, 8)
    s = 0.1
    wb = s * jax.random.normal(ks[0], (3, 3, cin, cb), jnp.float32)   # HWIO
    bb = s * jax.random.normal(ks[1], (cb,), jnp.float32)
    wn = s * jax.random.normal(ks[2], (cb, cn), jnp.float32)
    bn = s * jax.random.normal(ks[3], (cn,), jnp.float32)
    wc = s * jax.random.normal(ks[4], (cn, num_anchors * num_classes), jnp.float32)
    bc = s * jax.random.normal(ks[5], (num_anchors * num_classes,), jnp.float32)
    wr = s * jax.random.normal(ks[6], (cn, num_anchors * 4), jnp.float32)
    br = s * jax.random.normal(ks[7], (num_anchors * 4,), jnp.float32)
    return (wb, bb, wn, bn, wc, bc, wr, br)


if __name__ == "__main__":
    key = jax.random.PRNGKey(0)
    kx, kp = jax.random.split(key)

    N, Cin, H, W = 2, 4, 16, 16
    Cb, Cn = 32, 16
    num_classes, num_anchors = 2, 1

    x = jax.random.normal(kx, (N, Cin, H, W), jnp.float32)
    params = init_params(kp, Cin, Cb, Cn, num_classes, num_anchors)

    cls_out, reg_out = jax.jit(single_stage_detector)(x, params)
    jax.block_until_ready(cls_out)
    jax.block_until_ready(reg_out)

    cls_ref, reg_ref = _reference(x, params)
    assert cls_out.shape == (N, num_anchors * num_classes, H, W)
    assert reg_out.shape == (N, num_anchors * 4, H, W)
    # bf16 matmul operands (f32 accumulation) => loosened tolerance vs f32 reference.
    assert jnp.allclose(cls_out, cls_ref, atol=3e-2, rtol=3e-2)
    assert jnp.allclose(reg_out, reg_ref, atol=3e-2, rtol=3e-2)

    print("KERNEL_OK")
</pallas_src>

<mosaic_0001>
module attributes {stable_mosaic.version = 11 : i64} {
  func.func @_detector_kernel(%arg0: i32, %arg1: memref<1x18x18x4xf32, #tpu.memory_space<vmem>>, %arg2: memref<36x32xbf16, #tpu.memory_space<vmem>>, %arg3: memref<1x32xf32, #tpu.memory_space<vmem>>, %arg4: memref<32x128xbf16, #tpu.memory_space<vmem>>, %arg5: memref<1x128xf32, #tpu.memory_space<vmem>>, %arg6: memref<1x128x256xf32, #tpu.memory_space<vmem>>, %arg7: memref<256x36xf32, #tpu.memory_space<vmem>>) attributes {dimension_semantics = [#tpu.dimension_semantics<parallel>], iteration_bounds = array<i64: 2>, scalar_prefetch = 0 : i64, scratch_operands = 1 : i64, tpu.core_type = #tpu.core_type<tc>, window_params = [{transform_indices = @transform_0, window_bounds = array<i64: 1, 18, 18, 4>}, {pipeline_mode = #tpu.pipeline_mode<synchronous>, transform_indices = @transform_1, window_bounds = array<i64: 36, 32>}, {pipeline_mode = #tpu.pipeline_mode<synchronous>, transform_indices = @transform_2, window_bounds = array<i64: 1, 32>}, {pipeline_mode = #tpu.pipeline_mode<synchronous>, transform_indices = @transform_3, window_bounds = array<i64: 32, 128>}, {pipeline_mode = #tpu.pipeline_mode<synchronous>, transform_indices = @transform_4, window_bounds = array<i64: 1, 128>}, {transform_indices = @transform_5, window_bounds = array<i64: 1, 128, 256>}]} {
    %c0 = arith.constant 0 : index
    %c0_0 = arith.constant 0 : index
    %c0_1 = arith.constant 0 : index
    %c0_2 = arith.constant 0 : index
    %0 = vector.load %arg1[%c0, %c0_0, %c0_1, %c0_2] : memref<1x18x18x4xf32, #tpu.memory_space<vmem>>, vector<1x16x16x4xf32>
    %1 = vector.shape_cast %0 : vector<1x16x16x4xf32> to vector<16x16x4xf32>
    %2 = vector.shape_cast %1 : vector<16x16x4xf32> to vector<256x4xf32>
    %c0_3 = arith.constant 0 : index
    %c0_4 = arith.constant 0 : index
    %3 = vector.load %arg7[%c0_3, %c0_4] : memref<256x36xf32, #tpu.memory_space<vmem>>, vector<256x4xf32>
    tpu.vector_store %arg7[%c0_3, %c0_4], %2 {strides = array<i32>} : memref<256x36xf32, #tpu.memory_space<vmem>>, vector<256x4xf32>,
    %c0_5 = arith.constant 0 : index
    %c0_6 = arith.constant 0 : index
    %c1 = arith.constant 1 : index
    %c0_7 = arith.constant 0 : index
    %4 = vector.load %arg1[%c0_5, %c0_6, %c1, %c0_7] : memref<1x18x18x4xf32, #tpu.memory_space<vmem>>, vector<1x16x16x4xf32>
    %5 = vector.shape_cast %4 : vector<1x16x16x4xf32> to vector<16x16x4xf32>
    %6 = vector.shape_cast %5 : vector<16x16x4xf32> to vector<256x4xf32>
    %c0_8 = arith.constant 0 : index
    %c4 = arith.constant 4 : index
    %7 = vector.load %arg7[%c0_8, %c4] : memref<256x36xf32, #tpu.memory_space<vmem>>, vector<256x4xf32>
    tpu.vector_store %arg7[%c0_8, %c4], %6 {strides = array<i32>} : memref<256x36xf32, #tpu.memory_space<vmem>>, vector<256x4xf32>,
    %c0_9 = arith.constant 0 : index
    %c0_10 = arith.constant 0 : index
    %c2 = arith.constant 2 : index
    %c0_11 = arith.constant 0 : index
    %8 = vector.load %arg1[%c0_9, %c0_10, %c2, %c0_11] : memref<1x18x18x4xf32, #tpu.memory_space<vmem>>, vector<1x16x16x4xf32>
    %9 = vector.shape_cast %8 : vector<1x16x16x4xf32> to vector<16x16x4xf32>
    %10 = vector.shape_cast %9 : vector<16x16x4xf32> to vector<256x4xf32>
    %c0_12 = arith.constant 0 : index
    %c8 = arith.constant 8 : index
    %11 = vector.load %arg7[%c0_12, %c8] : memref<256x36xf32, #tpu.memory_space<vmem>>, vector<256x4xf32>
    tpu.vector_store %arg7[%c0_12, %c8], %10 {strides = array<i32>} : memref<256x36xf32, #tpu.memory_space<vmem>>, vector<256x4xf32>,
    %c0_13 = arith.constant 0 : index
    %c1_14 = arith.constant 1 : index
    %c0_15 = arith.constant 0 : index
    %c0_16 = arith.constant 0 : index
    %12 = vector.load %arg1[%c0_13, %c1_14, %c0_15, %c0_16] : memref<1x18x18x4xf32, #tpu.memory_space<vmem>>, vector<1x16x16x4xf32>
    %13 = vector.shape_cast %12 : vector<1x16x16x4xf32> to vector<16x16x4xf32>
    %14 = vector.shape_cast %13 : vector<16x16x4xf32> to vector<256x4xf32>
    %c0_17 = arith.constant 0 : index
    %c12 = arith.constant 12 : index
    %15 = vector.load %arg7[%c0_17, %c12] : memref<256x36xf32, #tpu.memory_space<vmem>>, vector<256x4xf32>
    tpu.vector_store %arg7[%c0_17, %c12], %14 {strides = array<i32>} : memref<256x36xf32, #tpu.memory_space<vmem>>, vector<256x4xf32>,
    %c0_18 = arith.constant 0 : index
    %c1_19 = arith.constant 1 : index
    %c1_20 = arith.constant 1 : index
    %c0_21 = arith.constant 0 : index
    %16 = vector.load %arg1[%c0_18, %c1_19, %c1_20, %c0_21] : memref<1x18x18x4xf32, #tpu.memory_space<vmem>>, vector<1x16x16x4xf32>
    %17 = vector.shape_cast %16 : vector<1x16x16x4xf32> to vector<16x16x4xf32>
    %18 = vector.shape_cast %17 : vector<16x16x4xf32> to vector<256x4xf32>
    %c0_22 = arith.constant 0 : index
    %c16 = arith.constant 16 : index
    %19 = vector.load %arg7[%c0_22, %c16] : memref<256x36xf32, #tpu.memory_space<vmem>>, vector<256x4xf32>
    tpu.vector_store %arg7[%c0_22, %c16], %18 {strides = array<i32>} : memref<256x36xf32, #tpu.memory_space<vmem>>, vector<256x4xf32>,
    %c0_23 = arith.constant 0 : index
    %c1_24 = arith.constant 1 : index
    %c2_25 = arith.constant 2 : index
    %c0_26 = arith.constant 0 : index
    %20 = vector.load %arg1[%c0_23, %c1_24, %c2_25, %c0_26] : memref<1x18x18x4xf32, #tpu.memory_space<vmem>>, vector<1x16x16x4xf32>
    %21 = vector.shape_cast %20 : vector<1x16x16x4xf32> to vector<16x16x4xf32>
    %22 = vector.shape_cast %21 : vector<16x16x4xf32> to vector<256x4xf32>
    %c0_27 = arith.constant 0 : index
    %c20 = arith.constant 20 : index
    %23 = vector.load %arg7[%c0_27, %c20] : memref<256x36xf32, #tpu.memory_space<vmem>>, vector<256x4xf32>
    tpu.vector_store %arg7[%c0_27, %c20], %22 {strides = array<i32>} : memref<256x36xf32, #tpu.memory_space<vmem>>, vector<256x4xf32>,
    %c0_28 = arith.constant 0 : index
    %c2_29 = arith.constant 2 : index
    %c0_30 = arith.constant 0 : index
    %c0_31 = arith.constant 0 : index
    %24 = vector.load %arg1[%c0_28, %c2_29, %c0_30, %c0_31] : memref<1x18x18x4xf32, #tpu.memory_space<vmem>>, vector<1x16x16x4xf32>
    %25 = vector.shape_cast %24 : vector<1x16x16x4xf32> to vector<16x16x4xf32>
    %26 = vector.shape_cast %25 : vector<16x16x4xf32> to vector<256x4xf32>
    %c0_32 = arith.constant 0 : index
    %c24 = arith.constant 24 : index
    %27 = vector.load %arg7[%c0_32, %c24] : memref<256x36xf32, #tpu.memory_space<vmem>>, vector<256x4xf32>
    tpu.vector_store %arg7[%c0_32, %c24], %26 {strides = array<i32>} : memref<256x36xf32, #tpu.memory_space<vmem>>, vector<256x4xf32>,
    %c0_33 = arith.constant 0 : index
    %c2_34 = arith.constant 2 : index
    %c1_35 = arith.constant 1 : index
    %c0_36 = arith.constant 0 : index
    %28 = vector.load %arg1[%c0_33, %c2_34, %c1_35, %c0_36] : memref<1x18x18x4xf32, #tpu.memory_space<vmem>>, vector<1x16x16x4xf32>
    %29 = vector.shape_cast %28 : vector<1x16x16x4xf32> to vector<16x16x4xf32>
    %30 = vector.shape_cast %29 : vector<16x16x4xf32> to vector<256x4xf32>
    %c0_37 = arith.constant 0 : index
    %c28 = arith.constant 28 : index
    %31 = vector.load %arg7[%c0_37, %c28] : memref<256x36xf32, #tpu.memory_space<vmem>>, vector<256x4xf32>
    tpu.vector_store %arg7[%c0_37, %c28], %30 {strides = array<i32>} : memref<256x36xf32, #tpu.memory_space<vmem>>, vector<256x4xf32>,
    %c0_38 = arith.constant 0 : index
    %c2_39 = arith.constant 2 : index
    %c2_40 = arith.constant 2 : index
    %c0_41 = arith.constant 0 : index
    %32 = vector.load %arg1[%c0_38, %c2_39, %c2_40, %c0_41] : memref<1x18x18x4xf32, #tpu.memory_space<vmem>>, vector<1x16x16x4xf32>
    %33 = vector.shape_cast %32 : vector<1x16x16x4xf32> to vector<16x16x4xf32>
    %34 = vector.shape_cast %33 : vector<16x16x4xf32> to vector<256x4xf32>
    %c0_42 = arith.constant 0 : index
    %c32 = arith.constant 32 : index
    %35 = vector.load %arg7[%c0_42, %c32] : memref<256x36xf32, #tpu.memory_space<vmem>>, vector<256x4xf32>
    tpu.vector_store %arg7[%c0_42, %c32], %34 {strides = array<i32>} : memref<256x36xf32, #tpu.memory_space<vmem>>, vector<256x4xf32>,
    %c0_43 = arith.constant 0 : index
    %c0_44 = arith.constant 0 : index
    %36 = vector.load %arg7[%c0_43, %c0_44] : memref<256x36xf32, #tpu.memory_space<vmem>>, vector<256x36xf32>
    %37 = arith.truncf %36 : vector<256x36xf32> to vector<256x36xbf16>
    %c0_45 = arith.constant 0 : index
    %c0_46 = arith.constant 0 : index
    %38 = vector.load %arg2[%c0_45, %c0_46] : memref<36x32xbf16, #tpu.memory_space<vmem>>, vector<36x32xbf16>
    %cst = arith.constant dense<0.000000e+00> : vector<256x32xf32>
    %39 = tpu.matmul %37, %38, %cst {dimension_numbers = #tpu.dot_dimension_numbers<[1], [0], [0], [1], [0, 0, 1, 1], [], []>} : vector<256x36xbf16>, vector<36x32xbf16>, vector<256x32xf32> -> vector<256x32xf32>
    %c0_47 = arith.constant 0 : index
    %c0_48 = arith.constant 0 : index
    %40 = vector.load %arg3[%c0_47, %c0_48] : memref<1x32xf32, #tpu.memory_space<vmem>>, vector<1x32xf32>
    %41 = vector.broadcast %40 : vector<1x32xf32> to vector<256x32xf32>
    %42 = arith.addf %39, %41 : vector<256x32xf32>
    %cst_49 = arith.constant 0.000000e+00 : f32
    %43 = vector.broadcast %cst_49 : f32 to vector<256x32xf32>
    %44 = arith.maximumf %42, %43 : vector<256x32xf32>
    %45 = arith.truncf %44 : vector<256x32xf32> to vector<256x32xbf16>
    %c0_50 = arith.constant 0 : index
    %c0_51 = arith.constant 0 : index
    %46 = vector.load %arg4[%c0_50, %c0_51] : memref<32x128xbf16, #tpu.memory_space<vmem>>, vector<32x128xbf16>
    %cst_52 = arith.constant dense<0.000000e+00> : vector<256x128xf32>
    %47 = tpu.matmul %45, %46, %cst_52 {dimension_numbers = #tpu.dot_dimension_numbers<[1], [0], [0], [1], [0, 0, 1, 1], [], []>} : vector<256x32xbf16>, vector<32x128xbf16>, vector<256x128xf32> -> vector<256x128xf32>
    %c0_53 = arith.constant 0 : index
    %c0_54 = arith.constant 0 : index
    %48 = vector.load %arg5[%c0_53, %c0_54] : memref<1x128xf32, #tpu.memory_space<vmem>>, vector<1x128xf32>
    %49 = vector.broadcast %48 : vector<1x128xf32> to vector<256x128xf32>
    %50 = arith.addf %47, %49 : vector<256x128xf32>
    %51 = tpu.transpose %50, [1, 0] : vector<256x128xf32> -> vector<128x256xf32>
    %52 = vector.shape_cast %51 : vector<128x256xf32> to vector<1x128x256xf32>
    %c0_55 = arith.constant 0 : index
    %c0_56 = arith.constant 0 : index
    %c0_57 = arith.constant 0 : index
    %53 = vector.load %arg6[%c0_55, %c0_56, %c0_57] : memref<1x128x256xf32, #tpu.memory_space<vmem>>, vector<1x128x256xf32>
    tpu.vector_store %arg6[%c0_55, %c0_56, %c0_57], %52 {strides = array<i32>} : memref<1x128x256xf32, #tpu.memory_space<vmem>>, vector<1x128x256xf32>,
    return
  }
  func.func @transform_0(%arg0: i32) -> (i32, i32, i32, i32) {
    %c0_i32 = arith.constant 0 : i32
    %c0_i32_0 = arith.constant 0 : i32
    %c0_i32_1 = arith.constant 0 : i32
    %c0_i32_2 = arith.constant 0 : i32
    return %arg0, %c0_i32, %c0_i32_0, %c0_i32_1 : i32, i32, i32, i32
  }
  func.func @transform_1(%arg0: i32) -> (i32, i32) {
    %c0_i32 = arith.constant 0 : i32
    %c0_i32_0 = arith.constant 0 : i32
    %c0_i32_1 = arith.constant 0 : i32
    return %c0_i32, %c0_i32_0 : i32, i32
  }
  func.func @transform_2(%arg0: i32) -> (i32, i32) {
    %c0_i32 = arith.constant 0 : i32
    %c0_i32_0 = arith.constant 0 : i32
    %c0_i32_1 = arith.constant 0 : i32
    return %c0_i32, %c0_i32_0 : i32, i32
  }
  func.func @transform_3(%arg0: i32) -> (i32, i32) {
    %c0_i32 = arith.constant 0 : i32
    %c0_i32_0 = arith.constant 0 : i32
    %c0_i32_1 = arith.constant 0 : i32
    return %c0_i32, %c0_i32_0 : i32, i32
  }
  func.func @transform_4(%arg0: i32) -> (i32, i32) {
    %c0_i32 = arith.constant 0 : i32
    %c0_i32_0 = arith.constant 0 : i32
    %c0_i32_1 = arith.constant 0 : i32
    return %c0_i32, %c0_i32_0 : i32, i32
  }
  func.func @transform_5(%arg0: i32) -> (i32, i32, i32) {
    %c0_i32 = arith.constant 0 : i32
    %c0_i32_0 = arith.constant 0 : i32
    %c0_i32_1 = arith.constant 0 : i32
    return %arg0, %c0_i32, %c0_i32_0 : i32, i32, i32
  }
}

</mosaic_0001>

<bundles_post_ra>
// kernel: single_stage_detector.1
= control target key start
LH: loop header
LB: loop body
LE: loop exit
PB: predicated region body
PF: predicated region fallthrough
CT: control target
= control target key end

     0   :  { %s2980_s18 = smov 0   ;;  %s4140_s0 = inlined_call_operand.vmem [shape: f32[2,18,18,4], index: 0, kind: input, shape index: {}]   ;;  %s4141_s1 = inlined_call_operand.vmem [shape: bf16[36,32], index: 1, kind: input, shape index: {}]   ;;  %s4142_s2 = inlined_call_operand.vmem [shape: f32[1,32], index: 2, kind: input, shape index: {}]   ;;  %s4143_s3 = inlined_call_operand.vmem [shape: bf16[32,128], index: 3, kind: input, shape index: {}]   ;;  %s4144_s4 = inlined_call_operand.vmem [shape: f32[1,128], index: 4, kind: input, shape index: {}]   ;;  %s4145_s5 = inlined_call_operand.vmem [shape: f32[2,128,256], index: 5, kind: output, shape index: {}]  }
   0x1 LB: > { %s2558_s19 = sadd.s32 4294967295, %s2940_s18   ;;  %p2562_p0 = scmp.ge.s32.totalorder %s2940_s18, 1  ;;  %s2940_s18 = sphi %s2980_s18, %s15_s18  }
   0x2   : > { %p187_p1 = scmp.lt.s32.totalorder %s2940_s18, 3 }
   0x4   : > { %p188_p2 = pnand %p2562_p0, %p187_p1 }
   0x5   : > { %p215_p3 = scmp.lt.s32.totalorder (!%p188_p2), %s2558_s19, 1  ;;  %s2942_s24 = smov (!%p188_p2), 4   ;;  %vm258_vm0 = vcmask (!%p188_p2), 31744   ;;  %v2929_v28 = vld [vmem:[%s4141_s1] sm:$0xff] (!%p188_p2)   ;;  %v2930_v31 = vld [vmem:[%s4141_s1 + $0x8] sm:$0xff] (!%p188_p2)   ;;  %vm1961_vm1 = vcmask (!%p188_p2), 1041408  }
   0x6   : > { %191 = sbr.rel (%p188_p2) target bundleno = 1231 (0x4cf), region = 40  ;;  %s2943_s25 = smov (!%p188_p2), 8   ;;  %2837 = vmatprep.subr.bf16.mxu0 (!%p188_p2), %v2929_v28  ;;  %v2931_v32 = vld [vmem:[%s4141_s1 + $0x10] ss:$0 sps:$4 sm:$0x33] (!%p188_p2)   ;;  %vm451_vm2 = vcmask (!%p188_p2), 64544  }
   0x7   : > { %s2944_s26 = smov (!%p188_p2), 12   ;;  %s2945_s27 = smov (!%p188_p2), 16   ;;  %2838 = vmatpush3.bf16.msra.mxu0 (!%p188_p2), %v2929_v28  ;;  %v1963_v33 = vsel (!%p188_p2), %vm1961_vm1, %v2931_v32, 0  ;;  %vm644_vm3 = vcmask (!%p188_p2), 97344   ;;  %vm838_vm4 = vcmask (!%p188_p2), 130144   ;;  %vm1031_vm5 = vcmask (!%p188_p2), 162944  }
   0x8   : > { %s2946_s28 = smov (!%p188_p2), 20   ;;  %s2947_s29 = smov (!%p188_p2), 24   ;;  %2839 = vmatprep.subr.bf16.mxu0 (!%p188_p2), %v2930_v31  ;;  %vm1224_vm6 = vcmask (!%p188_p2), 195744   ;;  %vm1418_vm7 = vcmask (!%p188_p2), 228544   ;;  %vm1611_vm8 = vcmask (!%p188_p2), 261344   ;;  %vm1804_vm9 = vcmask (!%p188_p2), 294144  }
   0x9   : > { %s2948_s7 = smov (!%p188_p2), 28   ;;  %s2949_s12 = smov (!%p188_p2), 32   ;;  %vm1912_vm10 = vcmask (!%p188_p2), 293888   ;;  %vm2197_vm11 = vcmask (!%p188_p2), 261120  }
   0xb   : > { %2840 = vmatpush3.bf16.msra.mxu0 (!%p188_p2), %v2930_v31 }
   0xc   : > { %2911 = vmatprep.subr.msk.bf16.mxu0 (!%p188_p2), %vm1961_vm1, %v2931_v32 }
   0xd   : > { %s4147_s19 = smov (!%p215_p3, %s2558_s19), 1 }
   0xe   : > { %s2912_s20 = smul.u32 432, %s4147_s19 }
   0xf   : > { %2842 = vmatpush3.bf16.msra.mxu0 %v1963_v33 }
  0x10   : > { %s2994_s23 = scalar_lea.vmem %s4140_s0, %s2912_s20 }
  0x11   : > { %v293_v0 = vld [vmem:[%s2994_s23 + $0x19] sm:$0xff]  ;;  %v291_v1 = vld [vmem:[%s2994_s23 + $0x1] sm:$0xff]  ;;  %v292_v3 = vld [vmem:[%s2994_s23 + $0x9] sm:$0xff] }
  0x12   : > { %359 = vrot.lane.b32.xlu1 %v293_v0, %s2942_s24  ;;  %355 = vrot.lane.b32.xlu0 %v291_v1, %s2942_s24  ;;  %v294_v2 = vld [vmem:[%s2994_s23 + $0x21] sm:$0xff]  ;;  %v2566_v5 = vld [vmem:[%s2994_s23 + $0x18] sm:$0xff] }
  0x13   : > { %v2567_v4 = vld [vmem:[%s2994_s23 + $0x20] sm:$0xff]  ;;  %v2569_v6 = vld [vmem:[%s2994_s23 + $0x38] sm:$0xff]  ;;  %v2568_v7 = vld [vmem:[%s2994_s23 + $0x30] sm:$0xff]  ;;  %261 = vst.msk [vmem:[#allocation2 + $0x10] sm:$0xff] %vm258_vm0, %v2566_v5 }
  0x14   : > { %262 = vst.msk [vmem:[#allocation2 + $0x18] sm:$0xff] %vm258_vm0, %v2567_v4  ;;  %264 = vst.msk [vmem:[#allocation2 + $0x28] sm:$0xff] %vm258_vm0, %v2569_v6  ;;  %v485_v8 = vld [vmem:[%s2994_s23 + $0xa] sm:$0xff]  ;;  %v484_v9 = vld [vmem:[%s2994_s23 + $0x2] sm:$0xff] }
  0x15   : > { %263 = vst.msk [vmem:[#allocation2 + $0x20] sm:$0xff] %vm258_vm0, %v2568_v7  ;;  %v3015_v10 = vld [vmem:[%s2994_s23 + $0x50] sm:$0xff]  ;;  %v3018_v11 = vld [vmem:[%s2994_s23 + $0x48] sm:$0xff]  ;;  %v3028_v13 = vld [vmem:[%s2994_s23 + $0x60] sm:$0xff] }
  0x16   : > { %361 = vrot.lane.b32.xlu1 %v294_v2, %s2942_s24  ;;  %357 = vrot.lane.b32.xlu0 %v292_v3, %s2942_s24  ;;  %266 = vst.msk [vmem:[#allocation2 + $0x38] sm:$0xff] %vm258_vm0, %v3015_v10  ;;  %265 = vst.msk [vmem:[#allocation2 + $0x30] sm:$0xff] %vm258_vm0, %v3018_v11  ;;  %v3025_v12 = vld [vmem:[%s2994_s23 + $0x68] sm:$0xff]  ;;  %v486_v15 = vld [vmem:[%s2994_s23 + $0x1a] sm:$0xff] }
  0x17   : > { %v487_v14 = vld [vmem:[%s2994_s23 + $0x22] sm:$0xff]  ;;  %268 = vst.msk [vmem:[#allocation2 + $0x48] sm:$0xff] %vm258_vm0, %v3025_v12  ;;  %267 = vst.msk [vmem:[#allocation2 + $0x40] sm:$0xff] %vm258_vm0, %v3028_v13  ;;  %v3042_v17 = vld [vmem:[%s2994_s23 + $0x78] sm:$0xff] }
  0x18   : > { %v3039_v16 = vld [vmem:[%s2994_s23 + $0x80] sm:$0xff]  ;;  %269 = vst.msk [vmem:[#allocation2 + $0x50] sm:$0xff] %vm258_vm0, %v3042_v17  ;;  %v227_v19 = vld [vmem:[%s2994_s23 + $0x8] sm:$0xff]  ;;  %v3057_v20 = vld [vmem:[%s2994_s23 + $0x98] sm:$0xff] }
  0x19   : > { %v226_v18 = vld [vmem:[%s2994_s23] sm:$0xff]  ;;  %270 = vst.msk [vmem:[#allocation2 + $0x58] sm:$0xff] %vm258_vm0, %v3039_v16  ;;  %260 = vst.msk [vmem:[#allocation2 + $0x8] sm:$0xff] %vm258_vm0, %v227_v19  ;;  %v3060_v21 = vld [vmem:[%s2994_s23 + $0x90] sm:$0xff] }
  0x1a   : > { %550 = vrot.lane.b32.xlu1 %v485_v8, %s2943_s25  ;;  %548 = vrot.lane.b32.xlu0 %v484_v9, %s2943_s25  ;;  %259 = vst.msk [vmem:[#allocation2] sm:$0xff] %vm258_vm0, %v226_v18  ;;  %272 = vst.msk [vmem:[#allocation2 + $0x68] sm:$0xff] %vm258_vm0, %v3057_v20  ;;  %v2601_v22 = vld [vmem:[%s2994_s23 + $0x39] sm:$0xff]  ;;  %v2600_v23 = vld [vmem:[%s2994_s23 + $0x31] sm:$0xff] }
  0x1b   : > { %271 = vst.msk [vmem:[#allocation2 + $0x60] sm:$0xff] %vm258_vm0, %v3060_v21  ;;  %v2633_v24 = vld [vmem:[%s2994_s23 + $0x3a] sm:$0xff]  ;;  %v2632_v25 = vld [vmem:[%s2994_s23 + $0x32] sm:$0xff]  ;;  %v3086_v27 = vld [vmem:[%s2994_s23 + $0xa8] sm:$0xff] }
  0x1c   : > { %v3083_v26 = vld [vmem:[%s2994_s23 + $0xb0] sm:$0xff]  ;;  %273 = vst.msk [vmem:[#allocation2 + $0x70] sm:$0xff] %vm258_vm0, %v3086_v27  ;;  %v3130_v36 = vld [vmem:[%s2994_s23 + $0xc8] sm:$0xff]  ;;  %v3133_v37 = vld [vmem:[%s2994_s23 + $0xc0] sm:$0xff] }
  0x1d   : > { %274 = vst.msk [vmem:[#allocation2 + $0x78] sm:$0xff] %vm258_vm0, %v3083_v26  ;;  %v2697_v29 = vld [vmem:[%s2994_s23 + $0x51] sm:$0xff]  ;;  %v2696_v30 = vld [vmem:[%s2994_s23 + $0x49] sm:$0xff]  ;;  %276 = vst.msk [vmem:[#allocation2 + $0x88] sm:$0xff] %vm258_vm0, %v3130_v36 }
  0x1e   : > { %554 = vrot.lane.b32.xlu1 %v487_v14, %s2943_s25  ;;  %552 = vrot.lane.b32.xlu0 %v486_v15, %s2943_s25  ;;  %v2729_v34 = vld [vmem:[%s2994_s23 + $0x52] sm:$0xff]  ;;  %v2728_v35 = vld [vmem:[%s2994_s23 + $0x4a] sm:$0xff]  ;;  %275 = vst.msk [vmem:[#allocation2 + $0x80] sm:$0xff] %vm258_vm0, %v3133_v37 }
  0x1f   : > { %v2605_v38 = vld [vmem:[%s2994_s23 + $0x69] sm:$0xff]  ;;  %v2604_v39 = vld [vmem:[%s2994_s23 + $0x61] sm:$0xff]  ;;  %v3163_v43 = vld [vmem:[%s2994_s23 + $0xd8] sm:$0xff] }
  0x20   : > { %v2637_v40 = vld [vmem:[%s2994_s23 + $0x6a] sm:$0xff]  ;;  %v2636_v41 = vld [vmem:[%s2994_s23 + $0x62] sm:$0xff]  ;;  %277 = vst.msk [vmem:[#allocation2 + $0x90] sm:$0xff] %vm258_vm0, %v3163_v43  ;;  %v3179_v45 = vld [vmem:[%s2994_s23 + $0x79] sm:$0xff] }
  0x21   : > { %v3160_v42 = vld [vmem:[%s2994_s23 + $0xe0] sm:$0xff]  ;;  %v3235_v3 = vld [vmem:[%s2994_s23 + $0xf0] sm:$0xff] }
  0x22   : > { %744 = vrot.lane.b32.xlu1 %v2567_v4, %s2944_s26  ;;  %742 = vrot.lane.b32.xlu0 %v2566_v5, %s2944_s26  ;;  %278 = vst.msk [vmem:[#allocation2 + $0x98] sm:$0xff] %vm258_vm0, %v3160_v42  ;;  %v3176_v44 = vld [vmem:[%s2994_s23 + $0x81] sm:$0xff]  ;;  %279 = vst.msk [vmem:[#allocation2 + $0xa0] sm:$0xff] %vm258_vm0, %v3235_v3 }
  0x23   : > { %v3196_v52 = vld [vmem:[%s2994_s23 + $0x82] sm:$0xff]  ;;  %v3199_v53 = vld [vmem:[%s2994_s23 + $0x7a] sm:$0xff] }
  0x26   : > { %748 = vrot.lane.b32.xlu1 %v2569_v6, %s2944_s26  ;;  %746 = vrot.lane.b32.xlu0 %v2568_v7, %s2944_s26 }
  0x2a   : > { %937 = vrot.lane.b32.xlu1 %v294_v2, %s2945_s27  ;;  %935 = vrot.lane.b32.xlu0 %v293_v0, %s2945_s27  ;;  %v3232_v2 = vld [vmem:[%s2994_s23 + $0xf8] sm:$0xff] }
  0x2b   : > { %280 = vst.msk [vmem:[#allocation2 + $0xa8] sm:$0xff] %vm258_vm0, %v3232_v2 }
  0x2e   : > { %941 = vrot.lane.b32.xlu1 %v2601_v22, %s2945_s27  ;;  %939 = vrot.lane.b32.xlu0 %v2600_v23, %s2945_s27 }
  0x32   : > { %1130 = vrot.lane.b32.xlu1 %v487_v14, %s2946_s28  ;;  %1128 = vrot.lane.b32.xlu0 %v486_v15, %s2946_s28 }
  0x36   : > { %1134 = vrot.lane.b32.xlu1 %v2633_v24, %s2946_s28  ;;  %1132 = vrot.lane.b32.xlu0 %v2632_v25, %s2946_s28 }
  0x3a   : > { %1324 = vrot.lane.b32.xlu1 %v2569_v6, %s2947_s29  ;;  %1322 = vrot.lane.b32.xlu0 %v2568_v7, %s2947_s29  ;;  %v3252_v6 = vld [vmem:[%s2994_s23 + $0x99] sm:$0xff]  ;;  %v3255_v7 = vld [vmem:[%s2994_s23 + $0x91] sm:$0xff] }
  0x3e   : > { %1328 = vrot.lane.b32.xlu1 %v3015_v10, %s2947_s29  ;;  %1326 = vrot.lane.b32.xlu0 %v3018_v11, %s2947_s29 }
  0x42   : > { %1517 = vrot.lane.b32.xlu1 %v2601_v22, %s2948_s7  ;;  %1515 = vrot.lane.b32.xlu0 %v2600_v23, %s2948_s7 }
  0x46   : > { %1521 = vrot.lane.b32.xlu1 %v2697_v29, %s2948_s7  ;;  %1519 = vrot.lane.b32.xlu0 %v2696_v30, %s2948_s7 }
  0x4a   : > { %1710 = vrot.lane.b32.xlu1 %v2633_v24, %s2949_s12  ;;  %1708 = vrot.lane.b32.xlu0 %v2632_v25, %s2949_s12 }
  0x4e   : > { %365 = vrot.lane.b32.xlu1 %v2601_v22, %s2942_s24  ;;  %363 = vrot.lane.b32.xlu0 %v2600_v23, %s2942_s24  ;;  %v3290_v22 = vld [vmem:[%s2994_s23 + $0x110] sm:$0xff]  ;;  %v3293_v23 = vld [vmem:[%s2994_s23 + $0x108] sm:$0xff] }
  0x4f   : > { %282 = vst.msk [vmem:[#allocation2 + $0xb8] sm:$0xff] %vm258_vm0, %v3290_v22  ;;  %281 = vst.msk [vmem:[#allocation2 + $0xb0] sm:$0xff] %vm258_vm0, %v3293_v23 }
  0x52   : > { %1714 = vrot.lane.b32.xlu1 %v2729_v34, %s2949_s12  ;;  %1712 = vrot.lane.b32.xlu0 %v2728_v35, %s2949_s12 }
  0x56   : > { %369 = vrot.lane.b32.xlu1 %v2697_v29, %s2942_s24  ;;  %367 = vrot.lane.b32.xlu0 %v2696_v30, %s2942_s24 }
  0x5a   : > { %558 = vrot.lane.b32.xlu1 %v2633_v24, %s2943_s25  ;;  %556 = vrot.lane.b32.xlu0 %v2632_v25, %s2943_s25  ;;  %v3310_v24 = vld [vmem:[%s2994_s23 + $0xb1] sm:$0xff]  ;;  %v3313_v25 = vld [vmem:[%s2994_s23 + $0xa9] sm:$0xff] }
  0x5e   : > { %562 = vrot.lane.b32.xlu1 %v2729_v34, %s2943_s25  ;;  %560 = vrot.lane.b32.xlu0 %v2728_v35, %s2943_s25 }
  0x62   : > { %752 = vrot.lane.b32.xlu1 %v3015_v10, %s2944_s26  ;;  %750 = vrot.lane.b32.xlu0 %v3018_v11, %s2944_s26 }
  0x66   : > { %756 = vrot.lane.b32.xlu1 %v3025_v12, %s2944_s26  ;;  %754 = vrot.lane.b32.xlu0 %v3028_v13, %s2944_s26 }
  0x6a   : > { %945 = vrot.lane.b32.xlu1 %v2697_v29, %s2945_s27  ;;  %943 = vrot.lane.b32.xlu0 %v2696_v30, %s2945_s27 }
  0x6e   : > { %949 = vrot.lane.b32.xlu1 %v2605_v38, %s2945_s27  ;;  %947 = vrot.lane.b32.xlu0 %v2604_v39, %s2945_s27 }
  0x72   : > { %1138 = vrot.lane.b32.xlu1 %v2729_v34, %s2946_s28  ;;  %1136 = vrot.lane.b32.xlu0 %v2728_v35, %s2946_s28 }
  0x76   : > { %1142 = vrot.lane.b32.xlu1 %v2637_v40, %s2946_s28  ;;  %1140 = vrot.lane.b32.xlu0 %v2636_v41, %s2946_s28 }
  0x7a   : > { %1332 = vrot.lane.b32.xlu1 %v3025_v12, %s2947_s29  ;;  %1330 = vrot.lane.b32.xlu0 %v3028_v13, %s2947_s29  ;;  %v3270_v12 = vld [vmem:[%s2994_s23 + $0x9a] sm:$0xff]  ;;  %v3273_v13 = vld [vmem:[%s2994_s23 + $0x92] sm:$0xff] }
  0x7e   : > { %1336 = vrot.lane.b32.xlu1 %v3039_v16, %s2947_s29  ;;  %1334 = vrot.lane.b32.xlu0 %v3042_v17, %s2947_s29 }
  0x82   : > { %1525 = vrot.lane.b32.xlu1 %v2605_v38, %s2948_s7  ;;  %1523 = vrot.lane.b32.xlu0 %v2604_v39, %s2948_s7 }
  0x84   : > { %v360_v46 = vpop.permute.xlu1 %359  ;;  %v356_v47 = vpop.permute.xlu0 %355 }
  0x85   : > { %454 = vst.msk [vmem:[#allocation2 + $0x10] sm:$0xff] %vm451_vm2, %v360_v46  ;;  %452 = vst.msk [vmem:[#allocation2] sm:$0xff] %vm451_vm2, %v356_v47 }
  0x86   : > { %1529 = vrot.lane.b32.xlu1 %v3176_v44, %s2948_s7  ;;  %1527 = vrot.lane.b32.xlu0 %v3179_v45, %s2948_s7 }
  0x88   : > { %v362_v48 = vpop.permute.xlu1 %361  ;;  %v358_v49 = vpop.permute.xlu0 %357 }
  0x89   : > { %455 = vst.msk [vmem:[#allocation2 + $0x18] sm:$0xff] %vm451_vm2, %v362_v48  ;;  %453 = vst.msk [vmem:[#allocation2 + $0x8] sm:$0xff] %vm451_vm2, %v358_v49 }
  0x8a   : > { %1718 = vrot.lane.b32.xlu1 %v2637_v40, %s2949_s12  ;;  %1716 = vrot.lane.b32.xlu0 %v2636_v41, %s2949_s12 }
  0x8c   : > { %v551_v50 = vpop.permute.xlu1 %550  ;;  %v549_v51 = vpop.permute.xlu0 %548 }
  0x8d   : > { %646 = vst.msk [vmem:[#allocation2 + $0x8] sm:$0xff] %vm644_vm3, %v551_v50  ;;  %645 = vst.msk [vmem:[#allocation2] sm:$0xff] %vm644_vm3, %v549_v51 }
  0x8e   : > { %373 = vrot.lane.b32.xlu1 %v2605_v38, %s2942_s24  ;;  %371 = vrot.lane.b32.xlu0 %v2604_v39, %s2942_s24 }
  0x90   : > { %v555_v54 = vpop.permute.xlu1 %554  ;;  %v553_v55 = vpop.permute.xlu0 %552 }
  0x91   : > { %648 = vst.msk [vmem:[#allocation2 + $0x18] sm:$0xff] %vm644_vm3, %v555_v54  ;;  %647 = vst.msk [vmem:[#allocation2 + $0x10] sm:$0xff] %vm644_vm3, %v553_v55 }
  0x92   : > { %1722 = vrot.lane.b32.xlu1 %v3196_v52, %s2949_s12  ;;  %1720 = vrot.lane.b32.xlu0 %v3199_v53, %s2949_s12 }
  0x94   : > { %v745_v56 = vpop.permute.xlu1 %744  ;;  %v743_v57 = vpop.permute.xlu0 %742 }
  0x95   : > { %840 = vst.msk [vmem:[#allocation2 + $0x8] sm:$0xff] %vm838_vm4, %v745_v56  ;;  %839 = vst.msk [vmem:[#allocation2] sm:$0xff] %vm838_vm4, %v743_v57 }
  0x96   : > { %377 = vrot.lane.b32.xlu1 %v3176_v44, %s2942_s24  ;;  %375 = vrot.lane.b32.xlu0 %v3179_v45, %s2942_s24 }
  0x98   : > { %v749_v58 = vpop.permute.xlu1 %748  ;;  %v747_v59 = vpop.permute.xlu0 %746 }
  0x99   : > { %842 = vst.msk [vmem:[#allocation2 + $0x18] sm:$0xff] %vm838_vm4, %v749_v58  ;;  %841 = vst.msk [vmem:[#allocation2 + $0x10] sm:$0xff] %vm838_vm4, %v747_v59  ;;  %v3366_v58 = vld [vmem:[%s2994_s23 + $0x128] sm:$0xff]  ;;  %v3369_v59 = vld [vmem:[%s2994_s23 + $0x120] sm:$0xff] }
  0x9a   : > { %566 = vrot.lane.b32.xlu1 %v2637_v40, %s2943_s25  ;;  %564 = vrot.lane.b32.xlu0 %v2636_v41, %s2943_s25  ;;  %284 = vst.msk [vmem:[#allocation2 + $0xc8] sm:$0xff] %vm258_vm0, %v3366_v58  ;;  %283 = vst.msk [vmem:[#allocation2 + $0xc0] sm:$0xff] %vm258_vm0, %v3369_v59 }
  0x9c   : > { %v938_v60 = vpop.permute.xlu1 %937  ;;  %v936_v61 = vpop.permute.xlu0 %935 }
  0x9d   : > { %1033 = vst.msk [vmem:[#allocation2 + $0x8] sm:$0xff] %vm1031_vm5, %v938_v60  ;;  %1032 = vst.msk [vmem:[#allocation2] sm:$0xff] %vm1031_vm5, %v936_v61  ;;  %v3386_v60 = vld [vmem:[%s2994_s23 + $0xc9] sm:$0xff]  ;;  %v3389_v61 = vld [vmem:[%s2994_s23 + $0xc1] sm:$0xff] }
  0x9e   : > { %570 = vrot.lane.b32.xlu1 %v3196_v52, %s2943_s25  ;;  %568 = vrot.lane.b32.xlu0 %v3199_v53, %s2943_s25 }
  0xa0   : > { %v942_v62 = vpop.permute.xlu1 %941  ;;  %v940_v63 = vpop.permute.xlu0 %939 }
  0xa1   : > { %1035 = vst.msk [vmem:[#allocation2 + $0x18] sm:$0xff] %vm1031_vm5, %v942_v62  ;;  %1034 = vst.msk [vmem:[#allocation2 + $0x10] sm:$0xff] %vm1031_vm5, %v940_v63 }
  0xa2   : > { %760 = vrot.lane.b32.xlu1 %v3039_v16, %s2944_s26  ;;  %758 = vrot.lane.b32.xlu0 %v3042_v17, %s2944_s26 }
  0xa4   : > { %v1131_v0 = vpop.permute.xlu1 %1130  ;;  %v1129_v1 = vpop.permute.xlu0 %1128 }
  0xa5   : > { %1226 = vst.msk [vmem:[#allocation2 + $0x8] sm:$0xff] %vm1224_vm6, %v1131_v0  ;;  %1225 = vst.msk [vmem:[#allocation2] sm:$0xff] %vm1224_vm6, %v1129_v1 }
  0xa6   : > { %764 = vrot.lane.b32.xlu1 %v3057_v20, %s2944_s26  ;;  %762 = vrot.lane.b32.xlu0 %v3060_v21, %s2944_s26 }
  0xa8   : > { %v1135_v4 = vpop.permute.xlu1 %1134  ;;  %v1133_v5 = vpop.permute.xlu0 %1132 }
  0xa9   : > { %1228 = vst.msk [vmem:[#allocation2 + $0x18] sm:$0xff] %vm1224_vm6, %v1135_v4  ;;  %1227 = vst.msk [vmem:[#allocation2 + $0x10] sm:$0xff] %vm1224_vm6, %v1133_v5  ;;  %v3402_v4 = vld [vmem:[%s2994_s23 + $0xca] sm:$0xff]  ;;  %v3405_v5 = vld [vmem:[%s2994_s23 + $0xc2] sm:$0xff] }
  0xaa   : > { %953 = vrot.lane.b32.xlu1 %v3176_v44, %s2945_s27  ;;  %951 = vrot.lane.b32.xlu0 %v3179_v45, %s2945_s27  ;;  %v2737_v44 = vld [vmem:[%s2994_s23 + $0xb2] sm:$0xff]  ;;  %v2736_v45 = vld [vmem:[%s2994_s23 + $0xaa] sm:$0xff] }
  0xac   : > { %v1325_v8 = vpop.permute.xlu1 %1324  ;;  %v1323_v9 = vpop.permute.xlu0 %1322 }
  0xad   : > { %1420 = vst.msk [vmem:[#allocation2 + $0x8] sm:$0xff] %vm1418_vm7, %v1325_v8  ;;  %1419 = vst.msk [vmem:[#allocation2] sm:$0xff] %vm1418_vm7, %v1323_v9 }
  0xae   : > { %957 = vrot.lane.b32.xlu1 %v3252_v6, %s2945_s27  ;;  %955 = vrot.lane.b32.xlu0 %v3255_v7, %s2945_s27 }
  0xb0   : > { %v1329_v10 = vpop.permute.xlu1 %1328  ;;  %v1327_v11 = vpop.permute.xlu0 %1326 }
  0xb1   : > { %1422 = vst.msk [vmem:[#allocation2 + $0x18] sm:$0xff] %vm1418_vm7, %v1329_v10  ;;  %1421 = vst.msk [vmem:[#allocation2 + $0x10] sm:$0xff] %vm1418_vm7, %v1327_v11 }
  0xb2   : > { %1146 = vrot.lane.b32.xlu1 %v3196_v52, %s2946_s28  ;;  %1144 = vrot.lane.b32.xlu0 %v3199_v53, %s2946_s28 }
  0xb4   : > { %v1518_v14 = vpop.permute.xlu1 %1517  ;;  %v1516_v15 = vpop.permute.xlu0 %1515 }
  0xb5   : > { %1613 = vst.msk [vmem:[#allocation2 + $0x8] sm:$0xff] %vm1611_vm8, %v1518_v14  ;;  %1612 = vst.msk [vmem:[#allocation2] sm:$0xff] %vm1611_vm8, %v1516_v15  ;;  %v3442_v14 = vld [vmem:[%s2994_s23 + $0xe1] sm:$0xff]  ;;  %v3445_v15 = vld [vmem:[%s2994_s23 + $0xd9] sm:$0xff] }
  0xb6   : > { %1150 = vrot.lane.b32.xlu1 %v3270_v12, %s2946_s28  ;;  %1148 = vrot.lane.b32.xlu0 %v3273_v13, %s2946_s28 }
  0xb8   : > { %v1522_v16 = vpop.permute.xlu1 %1521  ;;  %v1520_v17 = vpop.permute.xlu0 %1519 }
  0xb9   : > { %1615 = vst.msk [vmem:[#allocation2 + $0x18] sm:$0xff] %vm1611_vm8, %v1522_v16  ;;  %1614 = vst.msk [vmem:[#allocation2 + $0x10] sm:$0xff] %vm1611_vm8, %v1520_v17 }
  0xba   : > { %1340 = vrot.lane.b32.xlu1 %v3057_v20, %s2947_s29  ;;  %1338 = vrot.lane.b32.xlu0 %v3060_v21, %s2947_s29 }
  0xbc   : > { %v1711_v18 = vpop.permute.xlu1 %1710  ;;  %v1709_v19 = vpop.permute.xlu0 %1708 }
  0xbd   : > { %1806 = vst.msk [vmem:[#allocation2 + $0x8] sm:$0xff] %vm1804_vm9, %v1711_v18  ;;  %1805 = vst.msk [vmem:[#allocation2] sm:$0xff] %vm1804_vm9, %v1709_v19 }
  0xbe   : > { %1344 = vrot.lane.b32.xlu1 %v3083_v26, %s2947_s29  ;;  %1342 = vrot.lane.b32.xlu0 %v3086_v27, %s2947_s29 }
  0xc0   : > { %v366_v20 = vpop.permute.xlu1 %365  ;;  %v364_v21 = vpop.permute.xlu0 %363 }
  0xc1   : > { %457 = vst.msk [vmem:[#allocation2 + $0x28] sm:$0xff] %vm451_vm2, %v366_v20  ;;  %456 = vst.msk [vmem:[#allocation2 + $0x20] sm:$0xff] %vm451_vm2, %v364_v21 }
  0xc2   : > { %1533 = vrot.lane.b32.xlu1 %v3252_v6, %s2948_s7  ;;  %1531 = vrot.lane.b32.xlu0 %v3255_v7, %s2948_s7 }
  0xc4   : > { %v1715_v28 = vpop.permute.xlu1 %1714  ;;  %v1713_v29 = vpop.permute.xlu0 %1712  ;;  %v1837_v30 = vld [vmem:[#allocation2] sm:$0xff]  ;;  %v1838_v31 = vld [vmem:[#allocation2 + $0x8] sm:$0xff] }
  0xc5   : > { %1808 = vst.msk [vmem:[#allocation2 + $0x18] sm:$0xff] %vm1804_vm9, %v1715_v28  ;;  %1807 = vst.msk [vmem:[#allocation2 + $0x10] sm:$0xff] %vm1804_vm9, %v1713_v29  ;;  %v1869_v32 = vpack.c.bf16 %v1838_v31, %v1837_v30 }
  0xc6   : > { %1537 = vrot.lane.b32.xlu1 %v3310_v24, %s2948_s7  ;;  %1535 = vrot.lane.b32.xlu0 %v3313_v25, %s2948_s7 }
  0xc7   : > { %2843 = vmatprep.mubr.msk.bf16.mxu0 %vm1912_vm10, %v1869_v32  ;;  %v3468_v32 = vld [vmem:[%s2994_s23 + $0xe2] sm:$0xff] }
  0xc8   : > { %v370_v33 = vpop.permute.xlu1 %369  ;;  %v368_v34 = vpop.permute.xlu0 %367 }
  0xc9   : > { %459 = vst.msk [vmem:[#allocation2 + $0x38] sm:$0xff] %vm451_vm2, %v370_v33  ;;  %458 = vst.msk [vmem:[#allocation2 + $0x30] sm:$0xff] %vm451_vm2, %v368_v34  ;;  %v3471_v33 = vld [vmem:[%s2994_s23 + $0xda] sm:$0xff] }
  0xca   : > { %1726 = vrot.lane.b32.xlu1 %v3270_v12, %s2949_s12  ;;  %1724 = vrot.lane.b32.xlu0 %v3273_v13, %s2949_s12 }
  0xcc   : > { %v559_v35 = vpop.permute.xlu1 %558  ;;  %v557_v38 = vpop.permute.xlu0 %556  ;;  %v1839_v39 = vld [vmem:[#allocation2 + $0x10] sm:$0xff]  ;;  %v1840_v40 = vld [vmem:[#allocation2 + $0x18] sm:$0xff] }
  0xcd   : > { %650 = vst.msk [vmem:[#allocation2 + $0x28] sm:$0xff] %vm644_vm3, %v559_v35  ;;  %649 = vst.msk [vmem:[#allocation2 + $0x20] sm:$0xff] %vm644_vm3, %v557_v38  ;;  %v1870_v41 = vpack.c.bf16 %v1840_v40, %v1839_v39 }
  0xce   : > { %381 = vrot.lane.b32.xlu1 %v3252_v6, %s2942_s24  ;;  %379 = vrot.lane.b32.xlu0 %v3255_v7, %s2942_s24 }
  0xcf   : > { %2844 = vmatmul.mubr.msk.bf16.vlgmr.msra.gmra.mrb[0].mxu0 %vm1912_vm10, %v1870_v41 }
  0xd0   : > { %v563_v46 = vpop.permute.xlu1 %562  ;;  %v561_v47 = vpop.permute.xlu0 %560 }
  0xd1   : > { %652 = vst.msk [vmem:[#allocation2 + $0x38] sm:$0xff] %vm644_vm3, %v563_v46  ;;  %651 = vst.msk [vmem:[#allocation2 + $0x30] sm:$0xff] %vm644_vm3, %v561_v47 }
  0xd2   : > { %1730 = vrot.lane.b32.xlu1 %v2737_v44, %s2949_s12  ;;  %1728 = vrot.lane.b32.xlu0 %v2736_v45, %s2949_s12 }
  0xd4   : > { %v753_v48 = vpop.permute.xlu1 %752  ;;  %v751_v49 = vpop.permute.xlu0 %750 }
  0xd5   : > { %844 = vst.msk [vmem:[#allocation2 + $0x28] sm:$0xff] %vm838_vm4, %v753_v48  ;;  %843 = vst.msk [vmem:[#allocation2 + $0x20] sm:$0xff] %vm838_vm4, %v751_v49 }
  0xd6   : > { %385 = vrot.lane.b32.xlu1 %v3310_v24, %s2942_s24  ;;  %383 = vrot.lane.b32.xlu0 %v3313_v25, %s2942_s24 }
  0xd8   : > { %v757_v50 = vpop.permute.xlu1 %756  ;;  %v755_v51 = vpop.permute.xlu0 %754 }
  0xd9   : > { %846 = vst.msk [vmem:[#allocation2 + $0x38] sm:$0xff] %vm838_vm4, %v757_v50  ;;  %845 = vst.msk [vmem:[#allocation2 + $0x30] sm:$0xff] %vm838_vm4, %v755_v51  ;;  %v2932_v50 = vld [vmem:[%s4143_s3] sm:$0xff]  }
  0xda   : > { %574 = vrot.lane.b32.xlu1 %v3270_v12, %s2943_s25  ;;  %572 = vrot.lane.b32.xlu0 %v3273_v13, %s2943_s25  ;;  %v3422_v12 = vld [vmem:[%s2994_s23 + $0x140] sm:$0xff]  ;;  %v3425_v13 = vld [vmem:[%s2994_s23 + $0x138] sm:$0xff] }
  0xdb   : > { %286 = vst.msk [vmem:[#allocation2 + $0xd8] sm:$0xff] %vm258_vm0, %v3422_v12  ;;  %285 = vst.msk [vmem:[#allocation2 + $0xd0] sm:$0xff] %vm258_vm0, %v3425_v13  ;;  %2875 = vmatprep.subr.bf16.mxu1 %v2932_v50 }
  0xdc   : > { %v946_v52 = vpop.permute.xlu1 %945  ;;  %v944_v53 = vpop.permute.xlu0 %943  ;;  %2876 = vmatpush3.bf16.msra.mxu1 %v2932_v50  ;;  %v3672_v50 = vld [vmem:[%s2994_s23 + $0x12a] sm:$0xff] }
  0xdd   : > { %1037 = vst.msk [vmem:[#allocation2 + $0x28] sm:$0xff] %vm1031_vm5, %v946_v52  ;;  %1036 = vst.msk [vmem:[#allocation2 + $0x20] sm:$0xff] %vm1031_vm5, %v944_v53  ;;  %v2933_v53 = vld [vmem:[%s4143_s3 + $0x8] sm:$0xff]  }
  0xde   : > { %578 = vrot.lane.b32.xlu1 %v2737_v44, %s2943_s25  ;;  %576 = vrot.lane.b32.xlu0 %v2736_v45, %s2943_s25 }
  0xdf   : > { %2877 = vmatprep.subr.bf16.mxu1 %v2933_v53 }
  0xe0   : > { %v950_v54 = vpop.permute.xlu1 %949  ;;  %v948_v55 = vpop.permute.xlu0 %947  ;;  %2878 = vmatpush3.bf16.msra.mxu1 %v2933_v53 }
  0xe1   : > { %1039 = vst.msk [vmem:[#allocation2 + $0x38] sm:$0xff] %vm1031_vm5, %v950_v54  ;;  %1038 = vst.msk [vmem:[#allocation2 + $0x30] sm:$0xff] %vm1031_vm5, %v948_v55  ;;  %v3532_v54 = vld [vmem:[%s2994_s23 + $0xf9] sm:$0xff]  ;;  %v3535_v55 = vld [vmem:[%s2994_s23 + $0xf1] sm:$0xff] }
  0xe2   : > { %768 = vrot.lane.b32.xlu1 %v3083_v26, %s2944_s26  ;;  %766 = vrot.lane.b32.xlu0 %v3086_v27, %s2944_s26 }
  0xe4   : > { %v1139_v56 = vpop.permute.xlu1 %1138  ;;  %v1137_v57 = vpop.permute.xlu0 %1136 }
  0xe5   : > { %1230 = vst.msk [vmem:[#allocation2 + $0x28] sm:$0xff] %vm1224_vm6, %v1139_v56  ;;  %1229 = vst.msk [vmem:[#allocation2 + $0x20] sm:$0xff] %vm1224_vm6, %v1137_v57 }
  0xe6   : > { %772 = vrot.lane.b32.xlu1 %v3130_v36, %s2944_s26  ;;  %770 = vrot.lane.b32.xlu0 %v3133_v37, %s2944_s26 }
  0xe8   : > { %v1143_v26 = vpop.permute.xlu1 %1142  ;;  %v1141_v27 = vpop.permute.xlu0 %1140 }
  0xe9   : > { %1232 = vst.msk [vmem:[#allocation2 + $0x38] sm:$0xff] %vm1224_vm6, %v1143_v26  ;;  %1231 = vst.msk [vmem:[#allocation2 + $0x30] sm:$0xff] %vm1224_vm6, %v1141_v27 }
  0xea   : > { %961 = vrot.lane.b32.xlu1 %v3310_v24, %s2945_s27  ;;  %959 = vrot.lane.b32.xlu0 %v3313_v25, %s2945_s27 }
  0xec   : > { %v1333_v62 = vpop.permute.xlu1 %1332  ;;  %v1331_v63 = vpop.permute.xlu0 %1330 }
  0xed   : > { %1424 = vst.msk [vmem:[#allocation2 + $0x28] sm:$0xff] %vm1418_vm7, %v1333_v62  ;;  %1423 = vst.msk [vmem:[#allocation2 + $0x20] sm:$0xff] %vm1418_vm7, %v1331_v63 }
  0xee   : > { %965 = vrot.lane.b32.xlu1 %v3386_v60, %s2945_s27  ;;  %963 = vrot.lane.b32.xlu0 %v3389_v61, %s2945_s27 }
  0xf0   : > { %v1337_v0 = vpop.permute.xlu1 %1336  ;;  %v1335_v1 = vpop.permute.xlu0 %1334 }
  0xf1   : > { %1426 = vst.msk [vmem:[#allocation2 + $0x38] sm:$0xff] %vm1418_vm7, %v1337_v0  ;;  %1425 = vst.msk [vmem:[#allocation2 + $0x30] sm:$0xff] %vm1418_vm7, %v1335_v1 }
  0xf2   : > { %1154 = vrot.lane.b32.xlu1 %v2737_v44, %s2946_s28  ;;  %1152 = vrot.lane.b32.xlu0 %v2736_v45, %s2946_s28 }
  0xf4   : > { %v1526_v6 = vpop.permute.xlu1 %1525  ;;  %v1524_v7 = vpop.permute.xlu0 %1523 }
  0xf5   : > { %1617 = vst.msk [vmem:[#allocation2 + $0x28] sm:$0xff] %vm1611_vm8, %v1526_v6  ;;  %1616 = vst.msk [vmem:[#allocation2 + $0x20] sm:$0xff] %vm1611_vm8, %v1524_v7  ;;  %v3570_v6 = vld [vmem:[%s2994_s23 + $0x170] sm:$0xff] }
  0xf6   : > { %1158 = vrot.lane.b32.xlu1 %v3402_v4, %s2946_s28  ;;  %1156 = vrot.lane.b32.xlu0 %v3405_v5, %s2946_s28  ;;  %290 = vst.msk [vmem:[#allocation2 + $0xf8] sm:$0xff] %vm258_vm0, %v3570_v6 }
  0xf8   : > { %v1530_v8 = vpop.permute.xlu1 %1529  ;;  %v1528_v9 = vpop.permute.xlu0 %1527 }
  0xf9   : > { %1619 = vst.msk [vmem:[#allocation2 + $0x38] sm:$0xff] %vm1611_vm8, %v1530_v8  ;;  %1618 = vst.msk [vmem:[#allocation2 + $0x30] sm:$0xff] %vm1611_vm8, %v1528_v9  ;;  %v3590_v8 = vld [vmem:[%s2994_s23 + $0x111] sm:$0xff]  ;;  %v3593_v9 = vld [vmem:[%s2994_s23 + $0x109] sm:$0xff] }
  0xfa   : > { %1348 = vrot.lane.b32.xlu1 %v3130_v36, %s2947_s29  ;;  %1346 = vrot.lane.b32.xlu0 %v3133_v37, %s2947_s29 }
  0xfc   : > { %v1719_v10 = vpop.permute.xlu1 %1718  ;;  %v1717_v11 = vpop.permute.xlu0 %1716 }
  0xfd   : > { %1810 = vst.msk [vmem:[#allocation2 + $0x28] sm:$0xff] %vm1804_vm9, %v1719_v10  ;;  %1809 = vst.msk [vmem:[#allocation2 + $0x20] sm:$0xff] %vm1804_vm9, %v1717_v11 }
  0xfe   : > { %1352 = vrot.lane.b32.xlu1 %v3160_v42, %s2947_s29  ;;  %1350 = vrot.lane.b32.xlu0 %v3163_v43, %s2947_s29 }
 0x100   : > { %v374_v36 = vpop.permute.xlu1 %373  ;;  %v372_v37 = vpop.permute.xlu0 %371 }
 0x101   : > { %461 = vst.msk [vmem:[#allocation2 + $0x48] sm:$0xff] %vm451_vm2, %v374_v36  ;;  %460 = vst.msk [vmem:[#allocation2 + $0x40] sm:$0xff] %vm451_vm2, %v372_v37 }
 0x102   : > { %1541 = vrot.lane.b32.xlu1 %v3386_v60, %s2948_s7  ;;  %1539 = vrot.lane.b32.xlu0 %v3389_v61, %s2948_s7 }
 0x104   : > { %v1723_v16 = vpop.permute.xlu1 %1722  ;;  %v1721_v17 = vpop.permute.xlu0 %1720  ;;  %v1841_v18 = vld [vmem:[#allocation2 + $0x20] sm:$0xff]  ;;  %v1842_v19 = vld [vmem:[#allocation2 + $0x28] sm:$0xff] }
 0x105   : > { %1812 = vst.msk [vmem:[#allocation2 + $0x38] sm:$0xff] %vm1804_vm9, %v1723_v16  ;;  %1811 = vst.msk [vmem:[#allocation2 + $0x30] sm:$0xff] %vm1804_vm9, %v1721_v17  ;;  %v1871_v20 = vpack.c.bf16 %v1842_v19, %v1841_v18 }
 0x106   : > { %1545 = vrot.lane.b32.xlu1 %v3442_v14, %s2948_s7  ;;  %1543 = vrot.lane.b32.xlu0 %v3445_v15, %s2948_s7 }
 0x107   : > { %2847 = vmatprep.mubr.msk.bf16.mxu0 %vm1912_vm10, %v1871_v20 }
 0x108   : > { %v378_v21 = vpop.permute.xlu1 %377  ;;  %v376_v24 = vpop.permute.xlu0 %375 }
 0x109   : > { %463 = vst.msk [vmem:[#allocation2 + $0x58] sm:$0xff] %vm451_vm2, %v378_v21  ;;  %462 = vst.msk [vmem:[#allocation2 + $0x50] sm:$0xff] %vm451_vm2, %v376_v24  ;;  %v2745_v24 = vld [vmem:[%s2994_s23 + $0x112] sm:$0xff] }
 0x10a   : > { %1734 = vrot.lane.b32.xlu1 %v3402_v4, %s2949_s12  ;;  %1732 = vrot.lane.b32.xlu0 %v3405_v5, %s2949_s12 }
 0x10c   : > { %v567_v25 = vpop.permute.xlu1 %566  ;;  %v565_v28 = vpop.permute.xlu0 %564  ;;  %v1843_v29 = vld [vmem:[#allocation2 + $0x30] sm:$0xff]  ;;  %v1844_v30 = vld [vmem:[#allocation2 + $0x38] sm:$0xff] }
 0x10d   : > { %654 = vst.msk [vmem:[#allocation2 + $0x48] sm:$0xff] %vm644_vm3, %v567_v25  ;;  %653 = vst.msk [vmem:[#allocation2 + $0x40] sm:$0xff] %vm644_vm3, %v565_v28  ;;  %v1872_v31 = vpack.c.bf16 %v1844_v30, %v1843_v29  ;;  %v2744_v25 = vld [vmem:[%s2994_s23 + $0x10a] sm:$0xff] }
 0x10e   : > { %389 = vrot.lane.b32.xlu1 %v3386_v60, %s2942_s24  ;;  %387 = vrot.lane.b32.xlu0 %v3389_v61, %s2942_s24  ;;  %v3550_v60 = vld [vmem:[%s2994_s23 + $0xfa] sm:$0xff]  ;;  %v3553_v61 = vld [vmem:[%s2994_s23 + $0xf2] sm:$0xff] }
 0x10f   : > { %2848 = vmatmul.mubr.msk.bf16.gmra.mrb[4].mxu0 %vm1912_vm10, %v1872_v31 }
 0x110   : > { %v571_v34 = vpop.permute.xlu1 %570  ;;  %v569_v35 = vpop.permute.xlu0 %568 }
 0x111   : > { %656 = vst.msk [vmem:[#allocation2 + $0x58] sm:$0xff] %vm644_vm3, %v571_v34  ;;  %655 = vst.msk [vmem:[#allocation2 + $0x50] sm:$0xff] %vm644_vm3, %v569_v35 }
 0x112   : > { %1738 = vrot.lane.b32.xlu1 %v3468_v32, %s2949_s12  ;;  %1736 = vrot.lane.b32.xlu0 %v3471_v33, %s2949_s12 }
 0x114   : > { %v761_v38 = vpop.permute.xlu1 %760  ;;  %v759_v39 = vpop.permute.xlu0 %758 }
 0x115   : > { %848 = vst.msk [vmem:[#allocation2 + $0x48] sm:$0xff] %vm838_vm4, %v761_v38  ;;  %847 = vst.msk [vmem:[#allocation2 + $0x40] sm:$0xff] %vm838_vm4, %v759_v39 }
 0x116   : > { %393 = vrot.lane.b32.xlu1 %v3442_v14, %s2942_s24  ;;  %391 = vrot.lane.b32.xlu0 %v3445_v15, %s2942_s24 }
 0x118   : > { %v765_v40 = vpop.permute.xlu1 %764  ;;  %v763_v41 = vpop.permute.xlu0 %762 }
 0x119   : > { %850 = vst.msk [vmem:[#allocation2 + $0x58] sm:$0xff] %vm838_vm4, %v765_v40  ;;  %849 = vst.msk [vmem:[#allocation2 + $0x50] sm:$0xff] %vm838_vm4, %v763_v41 }
 0x11a   : > { %582 = vrot.lane.b32.xlu1 %v3402_v4, %s2943_s25  ;;  %580 = vrot.lane.b32.xlu0 %v3405_v5, %s2943_s25 }
 0x11c   : > { %v954_v44 = vpop.permute.xlu1 %953  ;;  %v952_v45 = vpop.permute.xlu0 %951 }
 0x11d   : > { %1041 = vst.msk [vmem:[#allocation2 + $0x48] sm:$0xff] %vm1031_vm5, %v954_v44  ;;  %1040 = vst.msk [vmem:[#allocation2 + $0x40] sm:$0xff] %vm1031_vm5, %v952_v45 }
 0x11e   : > { %586 = vrot.lane.b32.xlu1 %v3468_v32, %s2943_s25  ;;  %584 = vrot.lane.b32.xlu0 %v3471_v33, %s2943_s25 }
 0x120   : > { %v958_v46 = vpop.permute.xlu1 %957  ;;  %v956_v47 = vpop.permute.xlu0 %955 }
 0x121   : > { %1043 = vst.msk [vmem:[#allocation2 + $0x58] sm:$0xff] %vm1031_vm5, %v958_v46  ;;  %1042 = vst.msk [vmem:[#allocation2 + $0x50] sm:$0xff] %vm1031_vm5, %v956_v47 }
 0x122   : > { %776 = vrot.lane.b32.xlu1 %v3160_v42, %s2944_s26  ;;  %774 = vrot.lane.b32.xlu0 %v3163_v43, %s2944_s26  ;;  %v3513_v42 = vld [vmem:[%s2994_s23 + $0x158] sm:$0xff]  ;;  %v3516_v43 = vld [vmem:[%s2994_s23 + $0x150] sm:$0xff] }
 0x123   : > { %288 = vst.msk [vmem:[#allocation2 + $0xe8] sm:$0xff] %vm258_vm0, %v3513_v42  ;;  %287 = vst.msk [vmem:[#allocation2 + $0xe0] sm:$0xff] %vm258_vm0, %v3516_v43 }
 0x124   : > { %v1147_v48 = vpop.permute.xlu1 %1146  ;;  %v1145_v49 = vpop.permute.xlu0 %1144 }
 0x125   : > { %1234 = vst.msk [vmem:[#allocation2 + $0x48] sm:$0xff] %vm1224_vm6, %v1147_v48  ;;  %1233 = vst.msk [vmem:[#allocation2 + $0x40] sm:$0xff] %vm1224_vm6, %v1145_v49 }
 0x126   : > { %780 = vrot.lane.b32.xlu1 %v3232_v2, %s2944_s26  ;;  %778 = vrot.lane.b32.xlu0 %v3235_v3, %s2944_s26 }
 0x128   : > { %v1151_v51 = vpop.permute.xlu1 %1150  ;;  %v1149_v52 = vpop.permute.xlu0 %1148 }
 0x129   : > { %1236 = vst.msk [vmem:[#allocation2 + $0x58] sm:$0xff] %vm1224_vm6, %v1151_v51  ;;  %1235 = vst.msk [vmem:[#allocation2 + $0x50] sm:$0xff] %vm1224_vm6, %v1149_v52  ;;  %v3675_v51 = vld [vmem:[%s2994_s23 + $0x122] sm:$0xff] }
 0x12a   : > { %969 = vrot.lane.b32.xlu1 %v3442_v14, %s2945_s27  ;;  %967 = vrot.lane.b32.xlu0 %v3445_v15, %s2945_s27 }
 0x12c   : > { %v1341_v56 = vpop.permute.xlu1 %1340  ;;  %v1339_v57 = vpop.permute.xlu0 %1338 }
 0x12d   : > { %1428 = vst.msk [vmem:[#allocation2 + $0x48] sm:$0xff] %vm1418_vm7, %v1341_v56  ;;  %1427 = vst.msk [vmem:[#allocation2 + $0x40] sm:$0xff] %vm1418_vm7, %v1339_v57 }
 0x12e   : > { %973 = vrot.lane.b32.xlu1 %v3532_v54, %s2945_s27  ;;  %971 = vrot.lane.b32.xlu0 %v3535_v55, %s2945_s27 }
 0x130   : > { %v1345_v26 = vpop.permute.xlu1 %1344  ;;  %v1343_v27 = vpop.permute.xlu0 %1342 }
 0x131   : > { %1430 = vst.msk [vmem:[#allocation2 + $0x58] sm:$0xff] %vm1418_vm7, %v1345_v26  ;;  %1429 = vst.msk [vmem:[#allocation2 + $0x50] sm:$0xff] %vm1418_vm7, %v1343_v27 }
 0x132   : > { %1162 = vrot.lane.b32.xlu1 %v3468_v32, %s2946_s28  ;;  %1160 = vrot.lane.b32.xlu0 %v3471_v33, %s2946_s28 }
 0x134   : > { %v1534_v62 = vpop.permute.xlu1 %1533  ;;  %v1532_v63 = vpop.permute.xlu0 %1531 }
 0x135   : > { %1621 = vst.msk [vmem:[#allocation2 + $0x48] sm:$0xff] %vm1611_vm8, %v1534_v62  ;;  %1620 = vst.msk [vmem:[#allocation2 + $0x40] sm:$0xff] %vm1611_vm8, %v1532_v63 }
 0x136   : > { %1166 = vrot.lane.b32.xlu1 %v3550_v60, %s2946_s28  ;;  %1164 = vrot.lane.b32.xlu0 %v3553_v61, %s2946_s28 }
 0x138   : > { %v1538_v0 = vpop.permute.xlu1 %1537  ;;  %v1536_v1 = vpop.permute.xlu0 %1535 }
 0x139   : > { %1623 = vst.msk [vmem:[#allocation2 + $0x58] sm:$0xff] %vm1611_vm8, %v1538_v0  ;;  %1622 = vst.msk [vmem:[#allocation2 + $0x50] sm:$0xff] %vm1611_vm8, %v1536_v1 }
 0x13a   : > { %1356 = vrot.lane.b32.xlu1 %v3232_v2, %s2947_s29  ;;  %1354 = vrot.lane.b32.xlu0 %v3235_v3, %s2947_s29  ;;  %v3577_v2 = vld [vmem:[%s2994_s23 + $0x168] sm:$0xff] }
 0x13b   : > { %289 = vst.msk [vmem:[#allocation2 + $0xf0] sm:$0xff] %vm258_vm0, %v3577_v2 }
 0x13c   : > { %v1727_v4 = vpop.permute.xlu1 %1726  ;;  %v1725_v5 = vpop.permute.xlu0 %1724 }
 0x13d   : > { %1814 = vst.msk [vmem:[#allocation2 + $0x48] sm:$0xff] %vm1804_vm9, %v1727_v4  ;;  %1813 = vst.msk [vmem:[#allocation2 + $0x40] sm:$0xff] %vm1804_vm9, %v1725_v5 }
 0x13e   : > { %1360 = vrot.lane.b32.xlu1 %v3290_v22, %s2947_s29  ;;  %1358 = vrot.lane.b32.xlu0 %v3293_v23, %s2947_s29 }
 0x140   : > { %v382_v3 = vpop.permute.xlu1 %381  ;;  %v380_v7 = vpop.permute.xlu0 %379 }
 0x141   : > { %465 = vst.msk [vmem:[#allocation2 + $0x68] sm:$0xff] %vm451_vm2, %v382_v3  ;;  %464 = vst.msk [vmem:[#allocation2 + $0x60] sm:$0xff] %vm451_vm2, %v380_v7 }
 0x142   : > { %1549 = vrot.lane.b32.xlu1 %v3532_v54, %s2948_s7  ;;  %1547 = vrot.lane.b32.xlu0 %v3535_v55, %s2948_s7 }
 0x144   : > { %v1731_v10 = vpop.permute.xlu1 %1730  ;;  %v1729_v11 = vpop.permute.xlu0 %1728  ;;  %v1845_v36 = vld [vmem:[#allocation2 + $0x40] sm:$0xff]  ;;  %v1846_v37 = vld [vmem:[#allocation2 + $0x48] sm:$0xff] }
 0x145   : > { %1816 = vst.msk [vmem:[#allocation2 + $0x58] sm:$0xff] %vm1804_vm9, %v1731_v10  ;;  %1815 = vst.msk [vmem:[#allocation2 + $0x50] sm:$0xff] %vm1804_vm9, %v1729_v11  ;;  %v1873_v14 = vpack.c.bf16 %v1846_v37, %v1845_v36  ;;  %v3728_v10 = vld [vmem:[%s2994_s23 + $0x142] sm:$0xff]  ;;  %v3731_v11 = vld [vmem:[%s2994_s23 + $0x13a] sm:$0xff] }
 0x146   : > { %1553 = vrot.lane.b32.xlu1 %v3590_v8, %s2948_s7  ;;  %1551 = vrot.lane.b32.xlu0 %v3593_v9, %s2948_s7 }
 0x147   : > { %2851 = vmatprep.mubr.msk.bf16.mxu0 %vm1912_vm10, %v1873_v14 }
 0x148   : > { %v386_v15 = vpop.permute.xlu1 %385  ;;  %v384_v16 = vpop.permute.xlu0 %383 }
 0x149   : > { %467 = vst.msk [vmem:[#allocation2 + $0x78] sm:$0xff] %vm451_vm2, %v386_v15  ;;  %466 = vst.msk [vmem:[#allocation2 + $0x70] sm:$0xff] %vm451_vm2, %v384_v16 }
 0x14a   : > { %1742 = vrot.lane.b32.xlu1 %v3550_v60, %s2949_s12  ;;  %1740 = vrot.lane.b32.xlu0 %v3553_v61, %s2949_s12 }
 0x14c   : > { %v575_v17 = vpop.permute.xlu1 %574  ;;  %v573_v18 = vpop.permute.xlu0 %572  ;;  %v1847_v19 = vld [vmem:[#allocation2 + $0x50] sm:$0xff]  ;;  %v1848_v20 = vld [vmem:[#allocation2 + $0x58] sm:$0xff] }
 0x14d   : > { %658 = vst.msk [vmem:[#allocation2 + $0x68] sm:$0xff] %vm644_vm3, %v575_v17  ;;  %657 = vst.msk [vmem:[#allocation2 + $0x60] sm:$0xff] %vm644_vm3, %v573_v18  ;;  %v1874_v21 = vpack.c.bf16 %v1848_v20, %v1847_v19 }
 0x14e   : > { %397 = vrot.lane.b32.xlu1 %v3532_v54, %s2942_s24  ;;  %395 = vrot.lane.b32.xlu0 %v3535_v55, %s2942_s24 }
 0x14f   : > { %2852 = vmatmul.mubr.msk.bf16.gmra.mrb[8].mxu0 %vm1912_vm10, %v1874_v21 }
 0x150   : > { %v579_v28 = vpop.permute.xlu1 %578  ;;  %v577_v29 = vpop.permute.xlu0 %576 }
 0x151   : > { %660 = vst.msk [vmem:[#allocation2 + $0x78] sm:$0xff] %vm644_vm3, %v579_v28  ;;  %659 = vst.msk [vmem:[#allocation2 + $0x70] sm:$0xff] %vm644_vm3, %v577_v29 }
 0x152   : > { %1746 = vrot.lane.b32.xlu1 %v2745_v24, %s2949_s12  ;;  %1744 = vrot.lane.b32.xlu0 %v2744_v25, %s2949_s12 }
 0x154   : > { %v769_v30 = vpop.permute.xlu1 %768  ;;  %v767_v31 = vpop.permute.xlu0 %766 }
 0x155   : > { %852 = vst.msk [vmem:[#allocation2 + $0x68] sm:$0xff] %vm838_vm4, %v769_v30  ;;  %851 = vst.msk [vmem:[#allocation2 + $0x60] sm:$0xff] %vm838_vm4, %v767_v31 }
 0x156   : > { %401 = vrot.lane.b32.xlu1 %v3590_v8, %s2942_s24  ;;  %399 = vrot.lane.b32.xlu0 %v3593_v9, %s2942_s24 }
 0x158   : > { %v773_v32 = vpop.permute.xlu1 %772  ;;  %v771_v33 = vpop.permute.xlu0 %770 }
 0x159   : > { %854 = vst.msk [vmem:[#allocation2 + $0x78] sm:$0xff] %vm838_vm4, %v773_v32  ;;  %853 = vst.msk [vmem:[#allocation2 + $0x70] sm:$0xff] %vm838_vm4, %v771_v33 }
 0x15a   : > { %590 = vrot.lane.b32.xlu1 %v3550_v60, %s2943_s25  ;;  %588 = vrot.lane.b32.xlu0 %v3553_v61, %s2943_s25 }
 0x15c   : > { %v962_v34 = vpop.permute.xlu1 %961  ;;  %v960_v35 = vpop.permute.xlu0 %959 }
 0x15d   : > { %1045 = vst.msk [vmem:[#allocation2 + $0x68] sm:$0xff] %vm1031_vm5, %v962_v34  ;;  %1044 = vst.msk [vmem:[#allocation2 + $0x60] sm:$0xff] %vm1031_vm5, %v960_v35 }
 0x15e   : > { %594 = vrot.lane.b32.xlu1 %v2745_v24, %s2943_s25  ;;  %592 = vrot.lane.b32.xlu0 %v2744_v25, %s2943_s25 }
 0x160   : > { %v966_v38 = vpop.permute.xlu1 %965  ;;  %v964_v39 = vpop.permute.xlu0 %963 }
 0x161   : > { %1047 = vst.msk [vmem:[#allocation2 + $0x78] sm:$0xff] %vm1031_vm5, %v966_v38  ;;  %1046 = vst.msk [vmem:[#allocation2 + $0x70] sm:$0xff] %vm1031_vm5, %v964_v39 }
 0x162   : > { %784 = vrot.lane.b32.xlu1 %v3290_v22, %s2944_s26  ;;  %782 = vrot.lane.b32.xlu0 %v3293_v23, %s2944_s26  ;;  %v3656_v22 = vld [vmem:[%s2994_s23 + $0x129] sm:$0xff]  ;;  %v3659_v23 = vld [vmem:[%s2994_s23 + $0x121] sm:$0xff] }
 0x164   : > { %v1155_v40 = vpop.permute.xlu1 %1154  ;;  %v1153_v41 = vpop.permute.xlu0 %1152 }
 0x165   : > { %1238 = vst.msk [vmem:[#allocation2 + $0x68] sm:$0xff] %vm1224_vm6, %v1155_v40  ;;  %1237 = vst.msk [vmem:[#allocation2 + $0x60] sm:$0xff] %vm1224_vm6, %v1153_v41 }
 0x166   : > { %788 = vrot.lane.b32.xlu1 %v3366_v58, %s2944_s26  ;;  %786 = vrot.lane.b32.xlu0 %v3369_v59, %s2944_s26 }
 0x168   : > { %v1159_v44 = vpop.permute.xlu1 %1158  ;;  %v1157_v45 = vpop.permute.xlu0 %1156 }
 0x169   : > { %1240 = vst.msk [vmem:[#allocation2 + $0x78] sm:$0xff] %vm1224_vm6, %v1159_v44  ;;  %1239 = vst.msk [vmem:[#allocation2 + $0x70] sm:$0xff] %vm1224_vm6, %v1157_v45 }
 0x16a   : > { %977 = vrot.lane.b32.xlu1 %v3590_v8, %s2945_s27  ;;  %975 = vrot.lane.b32.xlu0 %v3593_v9, %s2945_s27 }
 0x16c   : > { %v1349_v46 = vpop.permute.xlu1 %1348  ;;  %v1347_v47 = vpop.permute.xlu0 %1346 }
 0x16d   : > { %1432 = vst.msk [vmem:[#allocation2 + $0x68] sm:$0xff] %vm1418_vm7, %v1349_v46  ;;  %1431 = vst.msk [vmem:[#allocation2 + $0x60] sm:$0xff] %vm1418_vm7, %v1347_v47 }
 0x16e   : > { %981 = vrot.lane.b32.xlu1 %v3656_v22, %s2945_s27  ;;  %979 = vrot.lane.b32.xlu0 %v3659_v23, %s2945_s27 }
 0x170   : > { %v1353_v48 = vpop.permute.xlu1 %1352  ;;  %v1351_v49 = vpop.permute.xlu0 %1350 }
 0x171   : > { %1434 = vst.msk [vmem:[#allocation2 + $0x78] sm:$0xff] %vm1418_vm7, %v1353_v48  ;;  %1433 = vst.msk [vmem:[#allocation2 + $0x70] sm:$0xff] %vm1418_vm7, %v1351_v49  ;;  %v3788_v48 = vld [vmem:[%s2994_s23 + $0x151] sm:$0xff] }
 0x172   : > { %1170 = vrot.lane.b32.xlu1 %v2745_v24, %s2946_s28  ;;  %1168 = vrot.lane.b32.xlu0 %v2744_v25, %s2946_s28  ;;  %v3762_v24 = vld [vmem:[%s4142_s2] ss:$0 sm:$0xff] }
 0x174   : > { %v1542_v52 = vpop.permute.xlu1 %1541  ;;  %v1540_v53 = vpop.permute.xlu0 %1539 }
 0x175   : > { %1625 = vst.msk [vmem:[#allocation2 + $0x68] sm:$0xff] %vm1611_vm8, %v1542_v52  ;;  %1624 = vst.msk [vmem:[#allocation2 + $0x60] sm:$0xff] %vm1611_vm8, %v1540_v53 }
 0x176   : > { %1174 = vrot.lane.b32.xlu1 %v3672_v50, %s2946_s28  ;;  %1172 = vrot.lane.b32.xlu0 %v3675_v51, %s2946_s28 }
 0x178   : > { %v1546_v54 = vpop.permute.xlu1 %1545  ;;  %v1544_v55 = vpop.permute.xlu0 %1543 }
 0x179   : > { %1627 = vst.msk [vmem:[#allocation2 + $0x78] sm:$0xff] %vm1611_vm8, %v1546_v54  ;;  %1626 = vst.msk [vmem:[#allocation2 + $0x70] sm:$0xff] %vm1611_vm8, %v1544_v55  ;;  %v3808_v54 = vld [vmem:[%s2994_s23 + $0x152] sm:$0xff] }
 0x17a   : > { %1364 = vrot.lane.b32.xlu1 %v3366_v58, %s2947_s29  ;;  %1362 = vrot.lane.b32.xlu0 %v3369_v59, %s2947_s29  ;;  %v3702_v58 = vld [vmem:[%s2994_s23 + $0x141] sm:$0xff]  ;;  %v3705_v59 = vld [vmem:[%s2994_s23 + $0x139] sm:$0xff] }
 0x17c   : > { %v1735_v56 = vpop.permute.xlu1 %1734  ;;  %v1733_v57 = vpop.permute.xlu0 %1732 }
 0x17d   : > { %1818 = vst.msk [vmem:[#allocation2 + $0x68] sm:$0xff] %vm1804_vm9, %v1735_v56  ;;  %1817 = vst.msk [vmem:[#allocation2 + $0x60] sm:$0xff] %vm1804_vm9, %v1733_v57 }
 0x17e   : > { %1368 = vrot.lane.b32.xlu1 %v3422_v12, %s2947_s29  ;;  %1366 = vrot.lane.b32.xlu0 %v3425_v13, %s2947_s29 }
 0x180   : > { %v390_v26 = vpop.permute.xlu1 %389  ;;  %v388_v27 = vpop.permute.xlu0 %387 }
 0x181   : > { %469 = vst.msk [vmem:[#allocation2 + $0x88] sm:$0xff] %vm451_vm2, %v390_v26  ;;  %468 = vst.msk [vmem:[#allocation2 + $0x80] sm:$0xff] %vm451_vm2, %v388_v27 }
 0x182   : > { %1557 = vrot.lane.b32.xlu1 %v3656_v22, %s2948_s7  ;;  %1555 = vrot.lane.b32.xlu0 %v3659_v23, %s2948_s7 }
 0x184   : > { %v1739_v60 = vpop.permute.xlu1 %1738  ;;  %v1737_v61 = vpop.permute.xlu0 %1736  ;;  %v1849_v62 = vld [vmem:[#allocation2 + $0x60] sm:$0xff]  ;;  %v1850_v63 = vld [vmem:[#allocation2 + $0x68] sm:$0xff] }
 0x185   : > { %1820 = vst.msk [vmem:[#allocation2 + $0x78] sm:$0xff] %vm1804_vm9, %v1739_v60  ;;  %1819 = vst.msk [vmem:[#allocation2 + $0x70] sm:$0xff] %vm1804_vm9, %v1737_v61  ;;  %v1875_v0 = vpack.c.bf16 %v1850_v63, %v1849_v62  ;;  %v3838_v60 = vld [vmem:[%s2994_s23 + $0x169] sm:$0xff] }
 0x186   : > { %1561 = vrot.lane.b32.xlu1 %v3702_v58, %s2948_s7  ;;  %1559 = vrot.lane.b32.xlu0 %v3705_v59, %s2948_s7 }
 0x187   : > { %2855 = vmatprep.mubr.msk.bf16.mxu0 %vm1912_vm10, %v1875_v0 }
 0x188   : > { %v394_v1 = vpop.permute.xlu1 %393  ;;  %v392_v4 = vpop.permute.xlu0 %391 }
 0x189   : > { %471 = vst.msk [vmem:[#allocation2 + $0x98] sm:$0xff] %vm451_vm2, %v394_v1  ;;  %470 = vst.msk [vmem:[#allocation2 + $0x90] sm:$0xff] %vm451_vm2, %v392_v4 }
 0x18a   : > { %1750 = vrot.lane.b32.xlu1 %v3672_v50, %s2949_s12  ;;  %1748 = vrot.lane.b32.xlu0 %v3675_v51, %s2949_s12 }
 0x18c   : > { %v583_v5 = vpop.permute.xlu1 %582  ;;  %v581_v3 = vpop.permute.xlu0 %580  ;;  %v1851_v7 = vld [vmem:[#allocation2 + $0x70] sm:$0xff]  ;;  %v1852_v8 = vld [vmem:[#allocation2 + $0x78] sm:$0xff] }
 0x18d   : > { %662 = vst.msk [vmem:[#allocation2 + $0x88] sm:$0xff] %vm644_vm3, %v583_v5  ;;  %661 = vst.msk [vmem:[#allocation2 + $0x80] sm:$0xff] %vm644_vm3, %v581_v3  ;;  %v1876_v9 = vpack.c.bf16 %v1852_v8, %v1851_v7 }
 0x18e   : > { %405 = vrot.lane.b32.xlu1 %v3656_v22, %s2942_s24  ;;  %403 = vrot.lane.b32.xlu0 %v3659_v23, %s2942_s24  ;;  %v3785_v23 = vld [vmem:[%s2994_s23 + $0x159] sm:$0xff] }
 0x18f   : > { %2856 = vmatmul.mubr.msk.bf16.gmra.mrb[12].mxu0 %vm1912_vm10, %v1876_v9  ;;  %v3861_v9 = vld [vmem:[%s2994_s23 + $0x172] sm:$0xff] }
 0x190   : > { %v587_v36 = vpop.permute.xlu1 %586  ;;  %v585_v37 = vpop.permute.xlu0 %584 }
 0x191   : > { %664 = vst.msk [vmem:[#allocation2 + $0x98] sm:$0xff] %vm644_vm3, %v587_v36  ;;  %663 = vst.msk [vmem:[#allocation2 + $0x90] sm:$0xff] %vm644_vm3, %v585_v37  ;;  %v3864_v36 = vld [vmem:[%s2994_s23 + $0x16a] sm:$0xff] }
 0x192   : > { %1754 = vrot.lane.b32.xlu1 %v3728_v10, %s2949_s12  ;;  %1752 = vrot.lane.b32.xlu0 %v3731_v11, %s2949_s12 }
 0x194   : > { %v777_v14 = vpop.permute.xlu1 %776  ;;  %v775_v15 = vpop.permute.xlu0 %774 }
 0x195   : > { %856 = vst.msk [vmem:[#allocation2 + $0x88] sm:$0xff] %vm838_vm4, %v777_v14  ;;  %855 = vst.msk [vmem:[#allocation2 + $0x80] sm:$0xff] %vm838_vm4, %v775_v15 }
 0x196   : > { %409 = vrot.lane.b32.xlu1 %v3702_v58, %s2942_s24  ;;  %407 = vrot.lane.b32.xlu0 %v3705_v59, %s2942_s24 }
 0x198   : > { %v781_v16 = vpop.permute.xlu1 %780  ;;  %v779_v17 = vpop.permute.xlu0 %778 }
 0x199   : > { %858 = vst.msk [vmem:[#allocation2 + $0x98] sm:$0xff] %vm838_vm4, %v781_v16  ;;  %857 = vst.msk [vmem:[#allocation2 + $0x90] sm:$0xff] %vm838_vm4, %v779_v17 }
 0x19a   : > { %598 = vrot.lane.b32.xlu1 %v3672_v50, %s2943_s25  ;;  %596 = vrot.lane.b32.xlu0 %v3675_v51, %s2943_s25  ;;  %v3805_v51 = vld [vmem:[%s2994_s23 + $0x15a] sm:$0xff] }
 0x19c   : > { %v970_v18 = vpop.permute.xlu1 %969  ;;  %v968_v19 = vpop.permute.xlu0 %967 }
 0x19d   : > { %1049 = vst.msk [vmem:[#allocation2 + $0x88] sm:$0xff] %vm1031_vm5, %v970_v18  ;;  %1048 = vst.msk [vmem:[#allocation2 + $0x80] sm:$0xff] %vm1031_vm5, %v968_v19 }
 0x19e   : > { %602 = vrot.lane.b32.xlu1 %v3728_v10, %s2943_s25  ;;  %600 = vrot.lane.b32.xlu0 %v3731_v11, %s2943_s25 }
 0x1a0   : > { %v974_v20 = vpop.permute.xlu1 %973  ;;  %v972_v21 = vpop.permute.xlu0 %971 }
 0x1a1   : > { %1051 = vst.msk [vmem:[#allocation2 + $0x98] sm:$0xff] %vm1031_vm5, %v974_v20  ;;  %1050 = vst.msk [vmem:[#allocation2 + $0x90] sm:$0xff] %vm1031_vm5, %v972_v21 }
 0x1a2   : > { %792 = vrot.lane.b32.xlu1 %v3422_v12, %s2944_s26  ;;  %790 = vrot.lane.b32.xlu0 %v3425_v13, %s2944_s26  ;;  %v2845_v25 = vpop.f32.mrb[0].mxu0 }
 0x1a3   : > { %v1999_v28 = vpop.f32.mrb[1].mxu0  ;;  %v2008_v29 = vadd.f32 %v2845_v25, %v3762_v24 }
 0x1a4   : > { %v1163_v30 = vpop.permute.xlu1 %1162  ;;  %v1161_v31 = vpop.permute.xlu0 %1160  ;;  %v2000_v32 = vadd.f32 %v3762_v24, %v1999_v28  ;;  %v2597_v28 = vld [vmem:[%s2994_s23 + $0x188] sm:$0xff] }
 0x1a5   : > { %1242 = vst.msk [vmem:[#allocation2 + $0x88] sm:$0xff] %vm1224_vm6, %v1163_v30  ;;  %1241 = vst.msk [vmem:[#allocation2 + $0x80] sm:$0xff] %vm1224_vm6, %v1161_v31  ;;  %v2846_v33 = vpop.f32.mrb[2].mxu0  ;;  %v2128_v13 = vmax.f32 %v2008_v29, 0.0 }
 0x1a6   : > { %v2011_v34 = vadd.f32 %v2846_v33, %v3762_v24  ;;  %v2002_v35 = vpop.f32.mrb[3].mxu0  ;;  %796 = vrot.lane.b32.xlu1 %v3513_v42, %s2944_s26  ;;  %794 = vrot.lane.b32.xlu0 %v3516_v43, %s2944_s26  ;;  %v2126_v41 = vmax.f32 %v2000_v32, 0.0  ;;  %v2596_v32 = vld [vmem:[%s2994_s23 + $0x180] sm:$0xff] }
 0x1a7   : > { %v2003_v12 = vadd.f32 %v3762_v24, %v2002_v35 }
 0x1a8   : > { %v2129_v38 = vmax.f32 %v2011_v34, 0.0  ;;  %v1167_v39 = vpop.permute.xlu1 %1166  ;;  %v1165_v40 = vpop.permute.xlu0 %1164 }
 0x1a9   : > { %v2127_v44 = vmax.f32 %v2003_v12, 0.0  ;;  %1244 = vst.msk [vmem:[#allocation2 + $0x98] sm:$0xff] %vm1224_vm6, %v1167_v39  ;;  %1243 = vst.msk [vmem:[#allocation2 + $0x90] sm:$0xff] %vm1224_vm6, %v1165_v40 }
 0x1aa   : > { %v2159_v45 = vpack.c.bf16 %v2129_v38, %v2128_v13  ;;  %985 = vrot.lane.b32.xlu1 %v3702_v58, %s2945_s27  ;;  %983 = vrot.lane.b32.xlu0 %v3705_v59, %s2945_s27 }
 0x1ab   : > { %v2158_v22 = vpack.c.bf16 %v2127_v44, %v2126_v41 }
 0x1ac   : > { %v1357_v46 = vpop.permute.xlu1 %1356  ;;  %v1355_v47 = vpop.permute.xlu0 %1354 }
 0x1ad   : > { %1436 = vst.msk [vmem:[#allocation2 + $0x88] sm:$0xff] %vm1418_vm7, %v1357_v46  ;;  %1435 = vst.msk [vmem:[#allocation2 + $0x80] sm:$0xff] %vm1418_vm7, %v1355_v47  ;;  %2879 = vmatprep.mubr.msk.bf16.mxu1 %vm2197_vm11, %v2158_v22  ;;  %v2629_v22 = vld [vmem:[%s2994_s23 + $0x189] sm:$0xff]  ;;  %v2628_v47 = vld [vmem:[%s2994_s23 + $0x181] sm:$0xff] }
 0x1ae   : > { %2880 = vmatmul.mubr.msk.bf16.vlgmr.msra.gmra.mrb[0].mxu1 %vm2197_vm11, %v2159_v45  ;;  %989 = vrot.lane.b32.xlu1 %v3785_v23, %s2945_s27 }
 0x1af   : > { %987 = vrot.lane.b32.xlu0 %v3788_v48, %s2945_s27 }
 0x1b0   : > { %v1361_v49 = vpop.permute.xlu1 %1360  ;;  %v1359_v50 = vpop.permute.xlu0 %1358 }
 0x1b1   : > { %1438 = vst.msk [vmem:[#allocation2 + $0x98] sm:$0xff] %vm1418_vm7, %v1361_v49  ;;  %1437 = vst.msk [vmem:[#allocation2 + $0x90] sm:$0xff] %vm1418_vm7, %v1359_v50  ;;  %v2661_v50 = vld [vmem:[%s2994_s23 + $0x18a] sm:$0xff] }
 0x1b2   : > { %1178 = vrot.lane.b32.xlu1 %v3728_v10, %s2946_s28 }
 0x1b3   : > { %1176 = vrot.lane.b32.xlu0 %v3731_v11, %s2946_s28 }
 0x1b4   : > { %v1550_v52 = vpop.permute.xlu1 %1549  ;;  %v1548_v53 = vpop.permute.xlu0 %1547 }
 0x1b5   : > { %1629 = vst.msk [vmem:[#allocation2 + $0x88] sm:$0xff] %vm1611_vm8, %v1550_v52  ;;  %1628 = vst.msk [vmem:[#allocation2 + $0x80] sm:$0xff] %vm1611_vm8, %v1548_v53  ;;  %v2660_v53 = vld [vmem:[%s2994_s23 + $0x182] sm:$0xff] }
 0x1b6   : > { %1182 = vrot.lane.b32.xlu1 %v3805_v51, %s2946_s28 }
 0x1b7   : > { %1180 = vrot.lane.b32.xlu0 %v3808_v54, %s2946_s28 }
 0x1b8   : > { %v1554_v55 = vpop.permute.xlu1 %1553  ;;  %v1552_v56 = vpop.permute.xlu0 %1551 }
 0x1b9   : > { %1631 = vst.msk [vmem:[#allocation2 + $0x98] sm:$0xff] %vm1611_vm8, %v1554_v55  ;;  %1630 = vst.msk [vmem:[#allocation2 + $0x90] sm:$0xff] %vm1611_vm8, %v1552_v56  ;;  %v2693_v56 = vld [vmem:[%s2994_s23 + $0x1a0] sm:$0xff] }
 0x1ba   : > { %1372 = vrot.lane.b32.xlu1 %v3513_v42, %s2947_s29  ;;  %v3835_v42 = vld [vmem:[%s2994_s23 + $0x171] sm:$0xff] }
 0x1bb   : > { %1370 = vrot.lane.b32.xlu0 %v3516_v43, %s2947_s29 }
 0x1bc   : > { %v1743_v57 = vpop.permute.xlu1 %1742  ;;  %v1741_v26 = vpop.permute.xlu0 %1740 }
 0x1bd   : > { %1822 = vst.msk [vmem:[#allocation2 + $0x88] sm:$0xff] %vm1804_vm9, %v1743_v57  ;;  %1821 = vst.msk [vmem:[#allocation2 + $0x80] sm:$0xff] %vm1804_vm9, %v1741_v26 }
 0x1be   : > { %1376 = vrot.lane.b32.xlu1 %v3570_v6, %s2947_s29 }
 0x1bf   : > { %1374 = vrot.lane.b32.xlu0 %v3577_v2, %s2947_s29 }
 0x1c0   : > { %v398_v27 = vpop.permute.xlu1 %397  ;;  %v396_v58 = vpop.permute.xlu0 %395 }
 0x1c1   : > { %473 = vst.msk [vmem:[#allocation2 + $0xa8] sm:$0xff] %vm451_vm2, %v398_v27  ;;  %472 = vst.msk [vmem:[#allocation2 + $0xa0] sm:$0xff] %vm451_vm2, %v396_v58  ;;  %v2692_v27 = vld [vmem:[%s2994_s23 + $0x198] sm:$0xff] }
 0x1c2   : > { %1565 = vrot.lane.b32.xlu1 %v3785_v23, %s2948_s7 }
 0x1c3   : > { %1563 = vrot.lane.b32.xlu0 %v3788_v48, %s2948_s7 }
 0x1c4   : > { %v1747_v43 = vpop.permute.xlu1 %1746  ;;  %v1745_v59 = vpop.permute.xlu0 %1744  ;;  %v1853_v61 = vld [vmem:[#allocation2 + $0x80] sm:$0xff]  ;;  %v1854_v62 = vld [vmem:[#allocation2 + $0x88] sm:$0xff] }
 0x1c5   : > { %1824 = vst.msk [vmem:[#allocation2 + $0x98] sm:$0xff] %vm1804_vm9, %v1747_v43  ;;  %1823 = vst.msk [vmem:[#allocation2 + $0x90] sm:$0xff] %vm1804_vm9, %v1745_v59  ;;  %v1877_v63 = vpack.c.bf16 %v1854_v62, %v1853_v61  ;;  %v2725_v43 = vld [vmem:[%s2994_s23 + $0x1a1] sm:$0xff]  ;;  %v2724_v61 = vld [vmem:[%s2994_s23 + $0x199] sm:$0xff] }
 0x1c6   : > { %1569 = vrot.lane.b32.xlu1 %v3835_v42, %s2948_s7 }
 0x1c7   : > { %1567 = vrot.lane.b32.xlu0 %v3838_v60, %s2948_s7  ;;  %2859 = vmatprep.mubr.msk.bf16.mxu0 %vm1912_vm10, %v1877_v63 }
 0x1c8   : > { %v402_v0 = vpop.permute.xlu1 %401  ;;  %v400_v1 = vpop.permute.xlu0 %399 }
 0x1c9   : > { %475 = vst.msk [vmem:[#allocation2 + $0xb8] sm:$0xff] %vm451_vm2, %v402_v0  ;;  %474 = vst.msk [vmem:[#allocation2 + $0xb0] sm:$0xff] %vm451_vm2, %v400_v1 }
 0x1ca   : > { %1758 = vrot.lane.b32.xlu1 %v3805_v51, %s2949_s12 }
 0x1cb   : > { %1756 = vrot.lane.b32.xlu0 %v3808_v54, %s2949_s12 }
 0x1cc   : > { %v591_v4 = vpop.permute.xlu1 %590  ;;  %v589_v5 = vpop.permute.xlu0 %588  ;;  %v1855_v3 = vld [vmem:[#allocation2 + $0x90] sm:$0xff]  ;;  %v1856_v7 = vld [vmem:[#allocation2 + $0x98] sm:$0xff] }
 0x1cd   : > { %666 = vst.msk [vmem:[#allocation2 + $0xa8] sm:$0xff] %vm644_vm3, %v591_v4  ;;  %665 = vst.msk [vmem:[#allocation2 + $0xa0] sm:$0xff] %vm644_vm3, %v589_v5  ;;  %v1878_v8 = vpack.c.bf16 %v1856_v7, %v1855_v3  ;;  %v2757_v5 = vld [vmem:[%s2994_s23 + $0x1a2] sm:$0xff] }
 0x1ce   : > { %413 = vrot.lane.b32.xlu1 %v3785_v23, %s2942_s24 }
 0x1cf   : > { %411 = vrot.lane.b32.xlu0 %v3788_v48, %s2942_s24  ;;  %2860 = vmatmul.mubr.msk.bf16.gmra.mrb[16].mxu0 %vm1912_vm10, %v1878_v8  ;;  %v2756_v8 = vld [vmem:[%s2994_s23 + $0x19a] sm:$0xff]  ;;  %s2799_s23 = sshll.u32 %s4147_s19, 8 }
 0x1d0   : > { %v595_v10 = vpop.permute.xlu1 %594  ;;  %v593_v11 = vpop.permute.xlu0 %592 }
 0x1d1   : > { %668 = vst.msk [vmem:[#allocation2 + $0xb8] sm:$0xff] %vm644_vm3, %v595_v10  ;;  %667 = vst.msk [vmem:[#allocation2 + $0xb0] sm:$0xff] %vm644_vm3, %v593_v11 }
 0x1d2   : > { %1762 = vrot.lane.b32.xlu1 %v3861_v9, %s2949_s12 }
 0x1d3   : > { %1760 = vrot.lane.b32.xlu0 %v3864_v36, %s2949_s12 }
 0x1d4   : > { %v785_v37 = vpop.permute.xlu1 %784  ;;  %v783_v14 = vpop.permute.xlu0 %782 }
 0x1d5   : > { %860 = vst.msk [vmem:[#allocation2 + $0xa8] sm:$0xff] %vm838_vm4, %v785_v37  ;;  %859 = vst.msk [vmem:[#allocation2 + $0xa0] sm:$0xff] %vm838_vm4, %v783_v14 }
 0x1d6   : > { %417 = vrot.lane.b32.xlu1 %v3835_v42, %s2942_s24 }
 0x1d7   : > { %415 = vrot.lane.b32.xlu0 %v3838_v60, %s2942_s24 }
 0x1d8   : > { %v789_v15 = vpop.permute.xlu1 %788  ;;  %v787_v16 = vpop.permute.xlu0 %786 }
 0x1d9   : > { %862 = vst.msk [vmem:[#allocation2 + $0xb8] sm:$0xff] %vm838_vm4, %v789_v15  ;;  %861 = vst.msk [vmem:[#allocation2 + $0xb0] sm:$0xff] %vm838_vm4, %v787_v16 }
 0x1da   : > { %606 = vrot.lane.b32.xlu1 %v3805_v51, %s2943_s25 }
 0x1db   : > { %604 = vrot.lane.b32.xlu0 %v3808_v54, %s2943_s25 }
 0x1dc   : > { %v978_v17 = vpop.permute.xlu1 %977  ;;  %v976_v18 = vpop.permute.xlu0 %975 }
 0x1dd   : > { %1053 = vst.msk [vmem:[#allocation2 + $0xa8] sm:$0xff] %vm1031_vm5, %v978_v17  ;;  %1052 = vst.msk [vmem:[#allocation2 + $0xa0] sm:$0xff] %vm1031_vm5, %v976_v18 }
 0x1de   : > { %610 = vrot.lane.b32.xlu1 %v3861_v9, %s2943_s25 }
 0x1df   : > { %608 = vrot.lane.b32.xlu0 %v3864_v36, %s2943_s25 }
 0x1e0   : > { %v982_v19 = vpop.permute.xlu1 %981  ;;  %v980_v20 = vpop.permute.xlu0 %979 }
 0x1e1   : > { %1055 = vst.msk [vmem:[#allocation2 + $0xb8] sm:$0xff] %vm1031_vm5, %v982_v19  ;;  %1054 = vst.msk [vmem:[#allocation2 + $0xb0] sm:$0xff] %vm1031_vm5, %v980_v20 }
 0x1e2   : > { %800 = vrot.lane.b32.xlu1 %v3570_v6, %s2944_s26  ;;  %v2849_v21 = vpop.f32.mrb[4].mxu0 }
 0x1e3   : > { %798 = vrot.lane.b32.xlu0 %v3577_v2, %s2944_s26  ;;  %v2015_v25 = vpop.f32.mrb[5].mxu0  ;;  %v2024_v29 = vadd.f32 %v2849_v21, %v3762_v24 }
 0x1e4   : > { %v1171_v30 = vpop.permute.xlu1 %1170  ;;  %v1169_v31 = vpop.permute.xlu0 %1168  ;;  %v2016_v33 = vadd.f32 %v3762_v24, %v2015_v25 }
 0x1e5   : > { %1246 = vst.msk [vmem:[#allocation2 + $0xa8] sm:$0xff] %vm1224_vm6, %v1171_v30  ;;  %1245 = vst.msk [vmem:[#allocation2 + $0xa0] sm:$0xff] %vm1224_vm6, %v1169_v31  ;;  %v2850_v34 = vpop.f32.mrb[6].mxu0  ;;  %v2132_v12 = vmax.f32 %v2024_v29, 0.0 }
 0x1e6   : > { %v2027_v6 = vadd.f32 %v2850_v34, %v3762_v24  ;;  %v2018_v35 = vpop.f32.mrb[7].mxu0  ;;  %804 = vrot.lane.b32.xlu1 %v2597_v28, %s2944_s26  ;;  %v2130_v40 = vmax.f32 %v2016_v33, 0.0 }
 0x1e7   : > { %v2019_v2 = vadd.f32 %v3762_v24, %v2018_v35  ;;  %802 = vrot.lane.b32.xlu0 %v2596_v32, %s2944_s26  ;;  %s4099_s26 = scalar_lea.vmem %s4145_s5, %s2799_s23 }
 0x1e8   : > { %v2133_v13 = vmax.f32 %v2027_v6, 0.0  ;;  %v1175_v38 = vpop.permute.xlu1 %1174  ;;  %v1173_v39 = vpop.permute.xlu0 %1172 }
 0x1e9   : > { %v2131_v41 = vmax.f32 %v2019_v2, 0.0  ;;  %1248 = vst.msk [vmem:[#allocation2 + $0xb8] sm:$0xff] %vm1224_vm6, %v1175_v38  ;;  %1247 = vst.msk [vmem:[#allocation2 + $0xb0] sm:$0xff] %vm1224_vm6, %v1173_v39 }
 0x1ea   : > { %v2161_v44 = vpack.c.bf16 %v2133_v13, %v2132_v12  ;;  %993 = vrot.lane.b32.xlu1 %v3835_v42, %s2945_s27 }
 0x1eb   : > { %v2160_v45 = vpack.c.bf16 %v2131_v41, %v2130_v40  ;;  %991 = vrot.lane.b32.xlu0 %v3838_v60, %s2945_s27 }
 0x1ec   : > { %v1365_v23 = vpop.permute.xlu1 %1364  ;;  %v1363_v46 = vpop.permute.xlu0 %1362 }
 0x1ed   : > { %1440 = vst.msk [vmem:[#allocation2 + $0xa8] sm:$0xff] %vm1418_vm7, %v1365_v23  ;;  %1439 = vst.msk [vmem:[#allocation2 + $0xa0] sm:$0xff] %vm1418_vm7, %v1363_v46  ;;  %2883 = vmatprep.mubr.msk.bf16.mxu1 %vm2197_vm11, %v2160_v45 }
 0x1ee   : > { %2884 = vmatmul.mubr.msk.bf16.gmra.mrb[4].mxu1 %vm2197_vm11, %v2161_v44  ;;  %997 = vrot.lane.b32.xlu1 %v2629_v22, %s2945_s27 }
 0x1ef   : > { %995 = vrot.lane.b32.xlu0 %v2628_v47, %s2945_s27 }
 0x1f0   : > { %v1369_v48 = vpop.permute.xlu1 %1368  ;;  %v1367_v49 = vpop.permute.xlu0 %1366 }
 0x1f1   : > { %1442 = vst.msk [vmem:[#allocation2 + $0xb8] sm:$0xff] %vm1418_vm7, %v1369_v48  ;;  %1441 = vst.msk [vmem:[#allocation2 + $0xb0] sm:$0xff] %vm1418_vm7, %v1367_v49 }
 0x1f2   : > { %1186 = vrot.lane.b32.xlu1 %v3861_v9, %s2946_s28 }
 0x1f3   : > { %1184 = vrot.lane.b32.xlu0 %v3864_v36, %s2946_s28 }
 0x1f4   : > { %v1558_v51 = vpop.permute.xlu1 %1557  ;;  %v1556_v52 = vpop.permute.xlu0 %1555 }
 0x1f5   : > { %1633 = vst.msk [vmem:[#allocation2 + $0xa8] sm:$0xff] %vm1611_vm8, %v1558_v51  ;;  %1632 = vst.msk [vmem:[#allocation2 + $0xa0] sm:$0xff] %vm1611_vm8, %v1556_v52 }
 0x1f6   : > { %1190 = vrot.lane.b32.xlu1 %v2661_v50, %s2946_s28 }
 0x1f7   : > { %1188 = vrot.lane.b32.xlu0 %v2660_v53, %s2946_s28 }
 0x1f8   : > { %v1562_v54 = vpop.permute.xlu1 %1561  ;;  %v1560_v55 = vpop.permute.xlu0 %1559 }
 0x1f9   : > { %1635 = vst.msk [vmem:[#allocation2 + $0xb8] sm:$0xff] %vm1611_vm8, %v1562_v54  ;;  %1634 = vst.msk [vmem:[#allocation2 + $0xb0] sm:$0xff] %vm1611_vm8, %v1560_v55 }
 0x1fa   : > { %1380 = vrot.lane.b32.xlu1 %v2597_v28, %s2947_s29 }
 0x1fb   : > { %1378 = vrot.lane.b32.xlu0 %v2596_v32, %s2947_s29 }
 0x1fc   : > { %v1751_v57 = vpop.permute.xlu1 %1750  ;;  %v1749_v26 = vpop.permute.xlu0 %1748 }
 0x1fd   : > { %1826 = vst.msk [vmem:[#allocation2 + $0xa8] sm:$0xff] %vm1804_vm9, %v1751_v57  ;;  %1825 = vst.msk [vmem:[#allocation2 + $0xa0] sm:$0xff] %vm1804_vm9, %v1749_v26 }
 0x1fe   : > { %1384 = vrot.lane.b32.xlu1 %v2693_v56, %s2947_s29 }
 0x1ff   : > { %1382 = vrot.lane.b32.xlu0 %v2692_v27, %s2947_s29 }
 0x200   : > { %v406_v58 = vpop.permute.xlu1 %405  ;;  %v404_v42 = vpop.permute.xlu0 %403 }
 0x201   : > { %477 = vst.msk [vmem:[#allocation2 + $0xc8] sm:$0xff] %vm451_vm2, %v406_v58  ;;  %476 = vst.msk [vmem:[#allocation2 + $0xc0] sm:$0xff] %vm451_vm2, %v404_v42 }
 0x202   : > { %1573 = vrot.lane.b32.xlu1 %v2629_v22, %s2948_s7 }
 0x203   : > { %1571 = vrot.lane.b32.xlu0 %v2628_v47, %s2948_s7 }
 0x204   : > { %v1755_v59 = vpop.permute.xlu1 %1754  ;;  %v1753_v60 = vpop.permute.xlu0 %1752  ;;  %v1857_v62 = vld [vmem:[#allocation2 + $0xa0] sm:$0xff]  ;;  %v1858_v63 = vld [vmem:[#allocation2 + $0xa8] sm:$0xff] }
 0x205   : > { %1828 = vst.msk [vmem:[#allocation2 + $0xb8] sm:$0xff] %vm1804_vm9, %v1755_v59  ;;  %1827 = vst.msk [vmem:[#allocation2 + $0xb0] sm:$0xff] %vm1804_vm9, %v1753_v60  ;;  %v1879_v0 = vpack.c.bf16 %v1858_v63, %v1857_v62 }
 0x206   : > { %1577 = vrot.lane.b32.xlu1 %v2725_v43, %s2948_s7 }
 0x207   : > { %1575 = vrot.lane.b32.xlu0 %v2724_v61, %s2948_s7  ;;  %2863 = vmatprep.mubr.msk.bf16.mxu0 %vm1912_vm10, %v1879_v0 }
 0x208   : > { %v410_v1 = vpop.permute.xlu1 %409  ;;  %v408_v4 = vpop.permute.xlu0 %407 }
 0x209   : > { %479 = vst.msk [vmem:[#allocation2 + $0xd8] sm:$0xff] %vm451_vm2, %v410_v1  ;;  %478 = vst.msk [vmem:[#allocation2 + $0xd0] sm:$0xff] %vm451_vm2, %v408_v4 }
 0x20a   : > { %1766 = vrot.lane.b32.xlu1 %v2661_v50, %s2949_s12 }
 0x20b   : > { %1764 = vrot.lane.b32.xlu0 %v2660_v53, %s2949_s12 }
 0x20c   : > { %v599_v3 = vpop.permute.xlu1 %598  ;;  %v597_v7 = vpop.permute.xlu0 %596  ;;  %v1859_v9 = vld [vmem:[#allocation2 + $0xb0] sm:$0xff]  ;;  %v1860_v10 = vld [vmem:[#allocation2 + $0xb8] sm:$0xff] }
 0x20d   : > { %670 = vst.msk [vmem:[#allocation2 + $0xc8] sm:$0xff] %vm644_vm3, %v599_v3  ;;  %669 = vst.msk [vmem:[#allocation2 + $0xc0] sm:$0xff] %vm644_vm3, %v597_v7  ;;  %v1880_v11 = vpack.c.bf16 %v1860_v10, %v1859_v9 }
 0x20e   : > { %1770 = vrot.lane.b32.xlu1 %v2757_v5, %s2949_s12 }
 0x20f   : > { %1768 = vrot.lane.b32.xlu0 %v2756_v8, %s2949_s12  ;;  %2864 = vmatmul.mubr.msk.bf16.gmra.mrb[20].mxu0 %vm1912_vm10, %v1880_v11 }
 0x210   : > { %v603_v36 = vpop.permute.xlu1 %602  ;;  %v601_v37 = vpop.permute.xlu0 %600 }
 0x211   : > { %672 = vst.msk [vmem:[#allocation2 + $0xd8] sm:$0xff] %vm644_vm3, %v603_v36  ;;  %671 = vst.msk [vmem:[#allocation2 + $0xd0] sm:$0xff] %vm644_vm3, %v601_v37 }
 0x214   : > { %v793_v14 = vpop.permute.xlu1 %792  ;;  %v791_v15 = vpop.permute.xlu0 %790 }
 0x215   : > { %864 = vst.msk [vmem:[#allocation2 + $0xc8] sm:$0xff] %vm838_vm4, %v793_v14  ;;  %863 = vst.msk [vmem:[#allocation2 + $0xc0] sm:$0xff] %vm838_vm4, %v791_v15 }
 0x218   : > { %v797_v16 = vpop.permute.xlu1 %796  ;;  %v795_v17 = vpop.permute.xlu0 %794 }
 0x219   : > { %866 = vst.msk [vmem:[#allocation2 + $0xd8] sm:$0xff] %vm838_vm4, %v797_v16  ;;  %865 = vst.msk [vmem:[#allocation2 + $0xd0] sm:$0xff] %vm838_vm4, %v795_v17 }
 0x21c   : > { %v986_v18 = vpop.permute.xlu1 %985  ;;  %v984_v19 = vpop.permute.xlu0 %983 }
 0x21d   : > { %1057 = vst.msk [vmem:[#allocation2 + $0xc8] sm:$0xff] %vm1031_vm5, %v986_v18  ;;  %1056 = vst.msk [vmem:[#allocation2 + $0xc0] sm:$0xff] %vm1031_vm5, %v984_v19 }
 0x220   : > { %v990_v20 = vpop.permute.xlu1 %989 }
 0x221   : > { %1059 = vst.msk [vmem:[#allocation2 + $0xd8] sm:$0xff] %vm1031_vm5, %v990_v20  ;;  %v988_v21 = vpop.permute.xlu0 %987 }
 0x222   : > { %1058 = vst.msk [vmem:[#allocation2 + $0xd0] sm:$0xff] %vm1031_vm5, %v988_v21  ;;  %v2853_v25 = vpop.f32.mrb[8].mxu0 }
 0x223   : > { %v2040_v28 = vadd.f32 %v2853_v25, %v3762_v24  ;;  %v2031_v29 = vpop.f32.mrb[9].mxu0 }
 0x224   : > { %v2032_v30 = vadd.f32 %v3762_v24, %v2031_v29  ;;  %v1179_v31 = vpop.permute.xlu1 %1178  ;;  %v2854_v32 = vpop.f32.mrb[10].mxu0 }
 0x225   : > { %1250 = vst.msk [vmem:[#allocation2 + $0xc8] sm:$0xff] %vm1224_vm6, %v1179_v31  ;;  %v1177_v33 = vpop.permute.xlu0 %1176  ;;  %v2043_v34 = vadd.f32 %v2854_v32, %v3762_v24  ;;  %v2034_v6 = vpop.f32.mrb[11].mxu0  ;;  %v2136_v2 = vmax.f32 %v2040_v28, 0.0 }
 0x226   : > { %1249 = vst.msk [vmem:[#allocation2 + $0xc0] sm:$0xff] %vm1224_vm6, %v1177_v33  ;;  %v2035_v35 = vadd.f32 %v3762_v24, %v2034_v6  ;;  %v2134_v13 = vmax.f32 %v2032_v30, 0.0 }
 0x227   : > { %v2137_v12 = vmax.f32 %v2043_v34, 0.0 }
 0x228   : > { %v2135_v38 = vmax.f32 %v2035_v35, 0.0  ;;  %v1183_v39 = vpop.permute.xlu1 %1182 }
 0x229   : > { %v2163_v40 = vpack.c.bf16 %v2137_v12, %v2136_v2  ;;  %1252 = vst.msk [vmem:[#allocation2 + $0xd8] sm:$0xff] %vm1224_vm6, %v1183_v39  ;;  %v1181_v41 = vpop.permute.xlu0 %1180 }
 0x22a   : > { %v2162_v44 = vpack.c.bf16 %v2135_v38, %v2134_v13  ;;  %1251 = vst.msk [vmem:[#allocation2 + $0xd0] sm:$0xff] %vm1224_vm6, %v1181_v41 }
 0x22c   : > { %v1373_v45 = vpop.permute.xlu1 %1372  ;;  %2887 = vmatprep.mubr.msk.bf16.mxu1 %vm2197_vm11, %v2162_v44 }
 0x22d   : > { %1444 = vst.msk [vmem:[#allocation2 + $0xc8] sm:$0xff] %vm1418_vm7, %v1373_v45  ;;  %v1371_v22 = vpop.permute.xlu0 %1370  ;;  %2888 = vmatmul.mubr.msk.bf16.gmra.mrb[8].mxu1 %vm2197_vm11, %v2163_v40  ;;  %v4037_v45 = vld [vmem:[%s4144_s4] ss:$0 sm:$0xff] }
 0x22e   : > { %1443 = vst.msk [vmem:[#allocation2 + $0xc0] sm:$0xff] %vm1418_vm7, %v1371_v22 }
 0x230   : > { %v1377_v23 = vpop.permute.xlu1 %1376 }
 0x231   : > { %1446 = vst.msk [vmem:[#allocation2 + $0xd8] sm:$0xff] %vm1418_vm7, %v1377_v23  ;;  %v1375_v46 = vpop.permute.xlu0 %1374 }
 0x232   : > { %1445 = vst.msk [vmem:[#allocation2 + $0xd0] sm:$0xff] %vm1418_vm7, %v1375_v46 }
 0x234   : > { %v1566_v47 = vpop.permute.xlu1 %1565 }
 0x235   : > { %1637 = vst.msk [vmem:[#allocation2 + $0xc8] sm:$0xff] %vm1611_vm8, %v1566_v47  ;;  %v1564_v48 = vpop.permute.xlu0 %1563 }
 0x236   : > { %1636 = vst.msk [vmem:[#allocation2 + $0xc0] sm:$0xff] %vm1611_vm8, %v1564_v48 }
 0x238   : > { %v1570_v49 = vpop.permute.xlu1 %1569 }
 0x239   : > { %1639 = vst.msk [vmem:[#allocation2 + $0xd8] sm:$0xff] %vm1611_vm8, %v1570_v49  ;;  %v1568_v50 = vpop.permute.xlu0 %1567 }
 0x23a   : > { %1638 = vst.msk [vmem:[#allocation2 + $0xd0] sm:$0xff] %vm1611_vm8, %v1568_v50 }
 0x23c   : > { %v1759_v51 = vpop.permute.xlu1 %1758 }
 0x23d   : > { %1830 = vst.msk [vmem:[#allocation2 + $0xc8] sm:$0xff] %vm1804_vm9, %v1759_v51  ;;  %v1757_v52 = vpop.permute.xlu0 %1756 }
 0x23e   : > { %1829 = vst.msk [vmem:[#allocation2 + $0xc0] sm:$0xff] %vm1804_vm9, %v1757_v52 }
 0x240   : > { %v414_v53 = vpop.permute.xlu1 %413 }
 0x241   : > { %481 = vst.msk [vmem:[#allocation2 + $0xe8] sm:$0xff] %vm451_vm2, %v414_v53  ;;  %v412_v54 = vpop.permute.xlu0 %411 }
 0x242   : > { %480 = vst.msk [vmem:[#allocation2 + $0xe0] sm:$0xff] %vm451_vm2, %v412_v54 }
 0x244   : > { %v1763_v55 = vpop.permute.xlu1 %1762  ;;  %v1862_v56 = vld [vmem:[#allocation2 + $0xc8] sm:$0xff] }
 0x245   : > { %1832 = vst.msk [vmem:[#allocation2 + $0xd8] sm:$0xff] %vm1804_vm9, %v1763_v55  ;;  %v1761_v57 = vpop.permute.xlu0 %1760  ;;  %v1861_v26 = vld [vmem:[#allocation2 + $0xc0] sm:$0xff] }
 0x246   : > { %1831 = vst.msk [vmem:[#allocation2 + $0xd0] sm:$0xff] %vm1804_vm9, %v1761_v57  ;;  %v1881_v27 = vpack.c.bf16 %v1862_v56, %v1861_v26 }
 0x248   : > { %2867 = vmatprep.mubr.msk.bf16.mxu0 %vm1912_vm10, %v1881_v27  ;;  %v418_v58 = vpop.permute.xlu1 %417 }
 0x249   : > { %483 = vst.msk [vmem:[#allocation2 + $0xf8] sm:$0xff] %vm451_vm2, %v418_v58  ;;  %v416_v42 = vpop.permute.xlu0 %415 }
 0x24a   : > { %482 = vst.msk [vmem:[#allocation2 + $0xf0] sm:$0xff] %vm451_vm2, %v416_v42 }
 0x24c   : > { %v607_v43 = vpop.permute.xlu1 %606  ;;  %v1864_v59 = vld [vmem:[#allocation2 + $0xd8] sm:$0xff] }
 0x24d   : > { %674 = vst.msk [vmem:[#allocation2 + $0xe8] sm:$0xff] %vm644_vm3, %v607_v43  ;;  %v605_v60 = vpop.permute.xlu0 %604  ;;  %v1863_v61 = vld [vmem:[#allocation2 + $0xd0] sm:$0xff] }
 0x24e   : > { %673 = vst.msk [vmem:[#allocation2 + $0xe0] sm:$0xff] %vm644_vm3, %v605_v60  ;;  %v1882_v62 = vpack.c.bf16 %v1864_v59, %v1863_v61 }
 0x250   : > { %2868 = vmatmul.mubr.msk.bf16.gmra.mrb[24].mxu0 %vm1912_vm10, %v1882_v62  ;;  %v611_v63 = vpop.permute.xlu1 %610 }
 0x251   : > { %676 = vst.msk [vmem:[#allocation2 + $0xf8] sm:$0xff] %vm644_vm3, %v611_v63  ;;  %v609_v0 = vpop.permute.xlu0 %608 }
 0x252   : > { %675 = vst.msk [vmem:[#allocation2 + $0xf0] sm:$0xff] %vm644_vm3, %v609_v0 }
 0x254   : > { %v801_v1 = vpop.permute.xlu1 %800 }
 0x255   : > { %868 = vst.msk [vmem:[#allocation2 + $0xe8] sm:$0xff] %vm838_vm4, %v801_v1  ;;  %v799_v4 = vpop.permute.xlu0 %798 }
 0x256   : > { %867 = vst.msk [vmem:[#allocation2 + $0xe0] sm:$0xff] %vm838_vm4, %v799_v4 }
 0x258   : > { %v805_v5 = vpop.permute.xlu1 %804 }
 0x259   : > { %870 = vst.msk [vmem:[#allocation2 + $0xf8] sm:$0xff] %vm838_vm4, %v805_v5  ;;  %v803_v3 = vpop.permute.xlu0 %802 }
 0x25a   : > { %869 = vst.msk [vmem:[#allocation2 + $0xf0] sm:$0xff] %vm838_vm4, %v803_v3 }
 0x25c   : > { %v994_v7 = vpop.permute.xlu1 %993 }
 0x25d   : > { %1061 = vst.msk [vmem:[#allocation2 + $0xe8] sm:$0xff] %vm1031_vm5, %v994_v7  ;;  %v992_v8 = vpop.permute.xlu0 %991 }
 0x25e   : > { %1060 = vst.msk [vmem:[#allocation2 + $0xe0] sm:$0xff] %vm1031_vm5, %v992_v8 }
 0x260   : > { %v998_v9 = vpop.permute.xlu1 %997 }
 0x261   : > { %1063 = vst.msk [vmem:[#allocation2 + $0xf8] sm:$0xff] %vm1031_vm5, %v998_v9  ;;  %v996_v10 = vpop.permute.xlu0 %995 }
 0x262   : > { %1062 = vst.msk [vmem:[#allocation2 + $0xf0] sm:$0xff] %vm1031_vm5, %v996_v10  ;;  %v2857_v11 = vpop.f32.mrb[12].mxu0 }
 0x263   : > { %v2056_v36 = vadd.f32 %v2857_v11, %v3762_v24  ;;  %v2047_v37 = vpop.f32.mrb[13].mxu0 }
 0x264   : > { %v2048_v14 = vadd.f32 %v3762_v24, %v2047_v37  ;;  %v1187_v15 = vpop.permute.xlu1 %1186  ;;  %v2858_v16 = vpop.f32.mrb[14].mxu0 }
 0x265   : > { %1254 = vst.msk [vmem:[#allocation2 + $0xe8] sm:$0xff] %vm1224_vm6, %v1187_v15  ;;  %v1185_v17 = vpop.permute.xlu0 %1184  ;;  %v2059_v18 = vadd.f32 %v2858_v16, %v3762_v24  ;;  %v2050_v19 = vpop.f32.mrb[15].mxu0  ;;  %v2140_v21 = vmax.f32 %v2056_v36, 0.0 }
 0x266   : > { %1253 = vst.msk [vmem:[#allocation2 + $0xe0] sm:$0xff] %vm1224_vm6, %v1185_v17  ;;  %v2051_v20 = vadd.f32 %v3762_v24, %v2050_v19  ;;  %v2138_v28 = vmax.f32 %v2048_v14, 0.0 }
 0x267   : > { %v2141_v25 = vmax.f32 %v2059_v18, 0.0 }
 0x268   : > { %v2139_v29 = vmax.f32 %v2051_v20, 0.0  ;;  %v1191_v30 = vpop.permute.xlu1 %1190 }
 0x269   : > { %v2165_v31 = vpack.c.bf16 %v2141_v25, %v2140_v21  ;;  %1256 = vst.msk [vmem:[#allocation2 + $0xf8] sm:$0xff] %vm1224_vm6, %v1191_v30  ;;  %v1189_v32 = vpop.permute.xlu0 %1188 }
 0x26a   : > { %v2164_v33 = vpack.c.bf16 %v2139_v29, %v2138_v28  ;;  %1255 = vst.msk [vmem:[#allocation2 + $0xf0] sm:$0xff] %vm1224_vm6, %v1189_v32 }
 0x26c   : > { %v1381_v34 = vpop.permute.xlu1 %1380  ;;  %2891 = vmatprep.mubr.msk.bf16.mxu1 %vm2197_vm11, %v2164_v33 }
 0x26d   : > { %1448 = vst.msk [vmem:[#allocation2 + $0xe8] sm:$0xff] %vm1418_vm7, %v1381_v34  ;;  %v1379_v6 = vpop.permute.xlu0 %1378  ;;  %2892 = vmatmul.mubr.msk.bf16.gmra.mrb[12].mxu1 %vm2197_vm11, %v2165_v31 }
 0x26e   : > { %1447 = vst.msk [vmem:[#allocation2 + $0xe0] sm:$0xff] %vm1418_vm7, %v1379_v6 }
 0x270   : > { %v1385_v35 = vpop.permute.xlu1 %1384 }
 0x271   : > { %1450 = vst.msk [vmem:[#allocation2 + $0xf8] sm:$0xff] %vm1418_vm7, %v1385_v35  ;;  %v1383_v2 = vpop.permute.xlu0 %1382 }
 0x272   : > { %1449 = vst.msk [vmem:[#allocation2 + $0xf0] sm:$0xff] %vm1418_vm7, %v1383_v2 }
 0x274   : > { %v1574_v12 = vpop.permute.xlu1 %1573 }
 0x275   : > { %1641 = vst.msk [vmem:[#allocation2 + $0xe8] sm:$0xff] %vm1611_vm8, %v1574_v12  ;;  %v1572_v13 = vpop.permute.xlu0 %1571 }
 0x276   : > { %1640 = vst.msk [vmem:[#allocation2 + $0xe0] sm:$0xff] %vm1611_vm8, %v1572_v13 }
 0x278   : > { %v1578_v38 = vpop.permute.xlu1 %1577 }
 0x279   : > { %1643 = vst.msk [vmem:[#allocation2 + $0xf8] sm:$0xff] %vm1611_vm8, %v1578_v38  ;;  %v1576_v39 = vpop.permute.xlu0 %1575 }
 0x27a   : > { %1642 = vst.msk [vmem:[#allocation2 + $0xf0] sm:$0xff] %vm1611_vm8, %v1576_v39 }
 0x27c   : > { %v1767_v40 = vpop.permute.xlu1 %1766 }
 0x27d   : > { %1834 = vst.msk [vmem:[#allocation2 + $0xe8] sm:$0xff] %vm1804_vm9, %v1767_v40  ;;  %v1765_v41 = vpop.permute.xlu0 %1764 }
 0x27e   : > { %1833 = vst.msk [vmem:[#allocation2 + $0xe0] sm:$0xff] %vm1804_vm9, %v1765_v41 }
 0x280   : > { %v1771_v44 = vpop.permute.xlu1 %1770 }
 0x281   : > { %1836 = vst.msk [vmem:[#allocation2 + $0xf8] sm:$0xff] %vm1804_vm9, %v1771_v44  ;;  %v1769_v22 = vpop.permute.xlu0 %1768  ;;  %v2881_v23 = vpop.f32.mrb[0].mxu1 }
 0x282   : > { %1835 = vst.msk [vmem:[#allocation2 + $0xf0] sm:$0xff] %vm1804_vm9, %v1769_v22  ;;  %v2280_v46 = vpop.f32.mrb[1].mxu1  ;;  %v2289_v57 = vadd.f32 %v2881_v23, %v4037_v45 }
 0x283   : > { %v2281_v47 = vadd.f32 %v4037_v45, %v2280_v46  ;;  %v2882_v48 = vpop.f32.mrb[2].mxu1 }
 0x284   : > { %v2283_v49 = vpop.f32.mrb[3].mxu1  ;;  %v1866_v50 = vld [vmem:[#allocation2 + $0xe8] sm:$0xff]  ;;  %v2292_v26 = vadd.f32 %v2882_v48, %v4037_v45 }
 0x285   : > { %2407 = vxpose.xlu0.b32.start [1/16] %v2281_v47, 128  ;;  %v1865_v51 = vld [vmem:[#allocation2 + $0xe0] sm:$0xff]  ;;  %v2284_v53 = vadd.f32 %v4037_v45, %v2283_v49 }
 0x286   : > { %v1883_v52 = vpack.c.bf16 %v1866_v50, %v1865_v51 }
 0x288   : > { %2871 = vmatprep.mubr.msk.bf16.mxu0 %vm1912_vm10, %v1883_v52  ;;  %v1868_v54 = vld [vmem:[#allocation2 + $0xf8] sm:$0xff] }
 0x289   : > { %2408 = vxpose.xlu0.b32.cont [2/16] %v2284_v53, 128  ;;  %v1867_v55 = vld [vmem:[#allocation2 + $0xf0] sm:$0xff] }
 0x28a   : > { %v1884_v56 = vpack.c.bf16 %v1868_v54, %v1867_v55 }
 0x28c   : > { %2872 = vmatmul.mubr.msk.bf16.gmra.mrb[28].mxu0 %vm1912_vm10, %v1884_v56 }
 0x28d   : > { %2409 = vxpose.xlu0.b32.cont [3/16] %v2289_v57, 128 }
 0x291   : > { %2410 = vxpose.xlu0.b32.cont [4/16] %v2292_v26, 128 }
 0x2a2   : > { %v2861_v27 = vpop.f32.mrb[16].mxu0 }
 0x2a3   : > { %v2072_v58 = vadd.f32 %v2861_v27, %v3762_v24  ;;  %v2063_v42 = vpop.f32.mrb[17].mxu0 }
 0x2a4   : > { %v2064_v43 = vadd.f32 %v3762_v24, %v2063_v42  ;;  %v2862_v59 = vpop.f32.mrb[18].mxu0 }
 0x2a5   : > { %v2075_v60 = vadd.f32 %v2862_v59, %v3762_v24  ;;  %v2066_v61 = vpop.f32.mrb[19].mxu0  ;;  %v2144_v63 = vmax.f32 %v2072_v58, 0.0 }
 0x2a6   : > { %v2067_v62 = vadd.f32 %v3762_v24, %v2066_v61  ;;  %v2142_v1 = vmax.f32 %v2064_v43, 0.0 }
 0x2a7   : > { %v2145_v0 = vmax.f32 %v2075_v60, 0.0 }
 0x2a8   : > { %v2143_v4 = vmax.f32 %v2067_v62, 0.0 }
 0x2a9   : > { %v2167_v5 = vpack.c.bf16 %v2145_v0, %v2144_v63 }
 0x2aa   : > { %v2166_v3 = vpack.c.bf16 %v2143_v4, %v2142_v1 }
 0x2ac   : > { %2895 = vmatprep.mubr.msk.bf16.mxu1 %vm2197_vm11, %v2166_v3 }
 0x2ad   : > { %2896 = vmatmul.mubr.msk.bf16.gmra.mrb[16].mxu1 %vm2197_vm11, %v2167_v5 }
 0x2c1   : > { %v2885_v7 = vpop.f32.mrb[4].mxu1 }
 0x2c2   : > { %v2296_v8 = vpop.f32.mrb[5].mxu1  ;;  %v2305_v37 = vadd.f32 %v2885_v7, %v4037_v45 }
 0x2c3   : > { %v2297_v9 = vadd.f32 %v4037_v45, %v2296_v8  ;;  %v2886_v10 = vpop.f32.mrb[6].mxu1 }
 0x2c4   : > { %v2299_v11 = vpop.f32.mrb[7].mxu1  ;;  %v2308_v14 = vadd.f32 %v2886_v10, %v4037_v45 }
 0x2c5   : > { %2411 = vxpose.xlu0.b32.cont [5/16] %v2297_v9, 128  ;;  %v2300_v36 = vadd.f32 %v4037_v45, %v2299_v11 }
 0x2c9   : > { %2412 = vxpose.xlu0.b32.cont [6/16] %v2300_v36, 128 }
 0x2cd   : > { %2413 = vxpose.xlu0.b32.cont [7/16] %v2305_v37, 128 }
 0x2d1   : > { %2414 = vxpose.xlu0.b32.cont [8/16] %v2308_v14, 128 }
 0x2e2   : > { %v2865_v15 = vpop.f32.mrb[20].mxu0 }
 0x2e3   : > { %v2088_v16 = vadd.f32 %v2865_v15, %v3762_v24  ;;  %v2079_v17 = vpop.f32.mrb[21].mxu0 }
 0x2e4   : > { %v2080_v18 = vadd.f32 %v3762_v24, %v2079_v17  ;;  %v2866_v19 = vpop.f32.mrb[22].mxu0 }
 0x2e5   : > { %v2091_v20 = vadd.f32 %v2866_v19, %v3762_v24  ;;  %v2082_v21 = vpop.f32.mrb[23].mxu0  ;;  %v2148_v28 = vmax.f32 %v2088_v16, 0.0 }
 0x2e6   : > { %v2083_v25 = vadd.f32 %v3762_v24, %v2082_v21  ;;  %v2146_v30 = vmax.f32 %v2080_v18, 0.0 }
 0x2e7   : > { %v2149_v29 = vmax.f32 %v2091_v20, 0.0 }
 0x2e8   : > { %v2147_v31 = vmax.f32 %v2083_v25, 0.0 }
 0x2e9   : > { %v2169_v32 = vpack.c.bf16 %v2149_v29, %v2148_v28 }
 0x2ea   : > { %v2168_v33 = vpack.c.bf16 %v2147_v31, %v2146_v30 }
 0x2ec   : > { %2899 = vmatprep.mubr.msk.bf16.mxu1 %vm2197_vm11, %v2168_v33 }
 0x2ed   : > { %2900 = vmatmul.mubr.msk.bf16.gmra.mrb[20].mxu1 %vm2197_vm11, %v2169_v32 }
 0x300   : > { %v2889_v34 = vpop.f32.mrb[8].mxu1 }
 0x301   : > { %v2312_v6 = vpop.f32.mrb[9].mxu1  ;;  %v2321_v38 = vadd.f32 %v2889_v34, %v4037_v45 }
 0x302   : > { %v2313_v35 = vadd.f32 %v4037_v45, %v2312_v6  ;;  %v2890_v2 = vpop.f32.mrb[10].mxu1 }
 0x303   : > { %v2315_v12 = vpop.f32.mrb[11].mxu1  ;;  %v2324_v39 = vadd.f32 %v2890_v2, %v4037_v45 }
 0x304   : > { %2415 = vxpose.xlu0.b32.cont [9/16] %v2313_v35, 128  ;;  %v2316_v13 = vadd.f32 %v4037_v45, %v2315_v12 }
 0x308   : > { %2416 = vxpose.xlu0.b32.cont [10/16] %v2316_v13, 128 }
 0x30c   : > { %2417 = vxpose.xlu0.b32.cont [11/16] %v2321_v38, 128 }
 0x310   : > { %2418 = vxpose.xlu0.b32.cont [12/16] %v2324_v39, 128 }
 0x323   : > { %v2869_v40 = vpop.f32.mrb[24].mxu0 }
 0x324   : > { %v2104_v41 = vadd.f32 %v2869_v40, %v3762_v24  ;;  %v2095_v44 = vpop.f32.mrb[25].mxu0 }
 0x325   : > { %v2096_v22 = vadd.f32 %v3762_v24, %v2095_v44  ;;  %v2870_v23 = vpop.f32.mrb[26].mxu0 }
 0x326   : > { %v2107_v46 = vadd.f32 %v2870_v23, %v3762_v24  ;;  %v2098_v47 = vpop.f32.mrb[27].mxu0  ;;  %v2152_v49 = vmax.f32 %v2104_v41, 0.0 }
 0x327   : > { %v2099_v48 = vadd.f32 %v3762_v24, %v2098_v47  ;;  %v2150_v51 = vmax.f32 %v2096_v22, 0.0 }
 0x328   : > { %v2153_v50 = vmax.f32 %v2107_v46, 0.0 }
 0x329   : > { %v2151_v52 = vmax.f32 %v2099_v48, 0.0 }
 0x32a   : > { %v2171_v53 = vpack.c.bf16 %v2153_v50, %v2152_v49 }
 0x32b   : > { %v2170_v54 = vpack.c.bf16 %v2151_v52, %v2150_v51 }
 0x32d   : > { %2903 = vmatprep.mubr.msk.bf16.mxu1 %vm2197_vm11, %v2170_v54 }
 0x32e   : > { %2904 = vmatmul.mubr.msk.bf16.gmra.mrb[24].mxu1 %vm2197_vm11, %v2171_v53 }
 0x340   : > { %v2893_v55 = vpop.f32.mrb[12].mxu1 }
 0x341   : > { %v2328_v56 = vpop.f32.mrb[13].mxu1  ;;  %v2337_v42 = vadd.f32 %v2893_v55, %v4037_v45 }
 0x342   : > { %v2329_v57 = vadd.f32 %v4037_v45, %v2328_v56  ;;  %v2894_v26 = vpop.f32.mrb[14].mxu1 }
 0x343   : > { %v2331_v27 = vpop.f32.mrb[15].mxu1  ;;  %v2340_v43 = vadd.f32 %v2894_v26, %v4037_v45 }
 0x344   : > { %2419 = vxpose.xlu0.b32.cont [13/16] %v2329_v57, 128  ;;  %v2332_v58 = vadd.f32 %v4037_v45, %v2331_v27 }
 0x348   : > { %2420 = vxpose.xlu0.b32.cont [14/16] %v2332_v58, 128 }
 0x34c   : > { %2421 = vxpose.xlu0.b32.cont [15/16] %v2337_v42, 128 }
 0x350   : > { %2422 = vxpose.xlu0.b32.end [16/16] %v2340_v43, 128 }
 0x35f   : > { %v2873_v59 = vpop.f32.mrb[28].mxu0 }
 0x360   : > { %v2120_v60 = vadd.f32 %v2873_v59, %v3762_v24  ;;  %v2111_v61 = vpop.f32.mrb[29].mxu0 }
 0x361   : > { %v2112_v62 = vadd.f32 %v3762_v24, %v2111_v61  ;;  %v2874_v63 = vpop.f32.mrb[30].mxu0 }
 0x362   : > { %v2123_v0 = vadd.f32 %v2874_v63, %v3762_v24  ;;  %v2114_v1 = vpop.f32.mrb[31].mxu0  ;;  %v2156_v5 = vmax.f32 %v2120_v60, 0.0 }
 0x363   : > { %v2115_v4 = vadd.f32 %v3762_v24, %v2114_v1  ;;  %v2154_v7 = vmax.f32 %v2112_v62, 0.0 }
 0x364   : > { %v2157_v3 = vmax.f32 %v2123_v0, 0.0 }
 0x365   : > { %v2155_v8 = vmax.f32 %v2115_v4, 0.0 }
 0x366   : > { %v2173_v9 = vpack.c.bf16 %v2157_v3, %v2156_v5 }
 0x367   : > { %v2172_v10 = vpack.c.bf16 %v2155_v8, %v2154_v7 }
 0x369   : > { %2907 = vmatprep.mubr.msk.bf16.mxu1 %vm2197_vm11, %v2172_v10 }
 0x36a   : > { %2908 = vmatmul.mubr.msk.bf16.gmra.mrb[28].mxu1 %vm2197_vm11, %v2173_v9 }
 0x380   : > { %v2897_v11 = vpop.f32.mrb[16].mxu1 }
 0x381   : > { %v2344_v36 = vpop.f32.mrb[17].mxu1  ;;  %v2353_v24 = vadd.f32 %v2897_v11, %v4037_v45 }
 0x382   : > { %v2345_v37 = vadd.f32 %v4037_v45, %v2344_v36  ;;  %v2898_v14 = vpop.f32.mrb[18].mxu1 }
 0x383   : > { %v2347_v15 = vpop.f32.mrb[19].mxu1  ;;  %v2356_v17 = vadd.f32 %v2898_v14, %v4037_v45 }
 0x384   : > { %2439 = vxpose.xlu1.b32.start [1/16] %v2345_v37, 128  ;;  %v2348_v16 = vadd.f32 %v4037_v45, %v2347_v15 }
 0x388   : > { %2440 = vxpose.xlu1.b32.cont [2/16] %v2348_v16, 128 }
 0x38c   : > { %2441 = vxpose.xlu1.b32.cont [3/16] %v2353_v24, 128 }
 0x390   : > { %2442 = vxpose.xlu1.b32.cont [4/16] %v2356_v17, 128 }
 0x394   : > { %v2423_v13 = vpop.trf.xlu0 }
 0x395   : > { %2471 = vst [vmem:[%s4099_s26] sm:$0xff] %v2423_v13 }
 0x398   : > { %v2424_v38 = vpop.trf.xlu0 }
 0x399   : > { %2473 = vst [vmem:[%s4099_s26 + $0x10] sm:$0xff] %v2424_v38 }
 0x39c   : > { %v2425_v39 = vpop.trf.xlu0 }
 0x39d   : > { %2475 = vst [vmem:[%s4099_s26 + $0x20] sm:$0xff] %v2425_v39 }
 0x3a0   : > { %v2426_v40 = vpop.trf.xlu0 }
 0x3a1   : > { %2477 = vst [vmem:[%s4099_s26 + $0x30] sm:$0xff] %v2426_v40 }
 0x3a4   : > { %v2427_v41 = vpop.trf.xlu0 }
 0x3a5   : > { %2479 = vst [vmem:[%s4099_s26 + $0x40] sm:$0xff] %v2427_v41 }
 0x3a8   : > { %v2428_v44 = vpop.trf.xlu0 }
 0x3a9   : > { %2481 = vst [vmem:[%s4099_s26 + $0x50] sm:$0xff] %v2428_v44 }
 0x3ac   : > { %v2429_v22 = vpop.trf.xlu0 }
 0x3ad   : > { %2483 = vst [vmem:[%s4099_s26 + $0x60] sm:$0xff] %v2429_v22 }
 0x3b0   : > { %v2430_v23 = vpop.trf.xlu0 }
 0x3b1   : > { %2485 = vst [vmem:[%s4099_s26 + $0x70] sm:$0xff] %v2430_v23 }
 0x3b4   : > { %v2431_v46 = vpop.trf.xlu0 }
 0x3b5   : > { %2487 = vst [vmem:[%s4099_s26 + $0x80] sm:$0xff] %v2431_v46 }
 0x3b8   : > { %v2432_v47 = vpop.trf.xlu0 }
 0x3b9   : > { %2489 = vst [vmem:[%s4099_s26 + $0x90] sm:$0xff] %v2432_v47 }
 0x3bc   : > { %v2433_v48 = vpop.trf.xlu0 }
 0x3bd   : > { %2491 = vst [vmem:[%s4099_s26 + $0xa0] sm:$0xff] %v2433_v48 }
 0x3c0   : > { %v2901_v18 = vpop.f32.mrb[20].mxu1  ;;  %v2434_v50 = vpop.trf.xlu0 }
 0x3c1   : > { %v2360_v19 = vpop.f32.mrb[21].mxu1  ;;  %v2369_v29 = vadd.f32 %v2901_v18, %v4037_v45  ;;  %2493 = vst [vmem:[%s4099_s26 + $0xb0] sm:$0xff] %v2434_v50 }
 0x3c2   : > { %v2361_v20 = vadd.f32 %v4037_v45, %v2360_v19  ;;  %v2902_v21 = vpop.f32.mrb[22].mxu1 }
 0x3c3   : > { %v2363_v25 = vpop.f32.mrb[23].mxu1  ;;  %v2372_v30 = vadd.f32 %v2902_v21, %v4037_v45 }
 0x3c4   : > { %2443 = vxpose.xlu1.b32.cont [5/16] %v2361_v20, 128  ;;  %v2364_v28 = vadd.f32 %v4037_v45, %v2363_v25  ;;  %v2435_v55 = vpop.trf.xlu0 }
 0x3c5   : > { %2495 = vst [vmem:[%s4099_s26 + $0xc0] sm:$0xff] %v2435_v55 }
 0x3c8   : > { %2444 = vxpose.xlu1.b32.cont [6/16] %v2364_v28, 128  ;;  %v2436_v57 = vpop.trf.xlu0 }
 0x3c9   : > { %2497 = vst [vmem:[%s4099_s26 + $0xd0] sm:$0xff] %v2436_v57 }
 0x3cc   : > { %2445 = vxpose.xlu1.b32.cont [7/16] %v2369_v29, 128  ;;  %v2437_v27 = vpop.trf.xlu0 }
 0x3cd   : > { %2499 = vst [vmem:[%s4099_s26 + $0xe0] sm:$0xff] %v2437_v27 }
 0x3d0   : > { %2446 = vxpose.xlu1.b32.cont [8/16] %v2372_v30, 128  ;;  %v2438_v42 = vpop.trf.xlu0 }
 0x3d1   : > { %2501 = vst [vmem:[%s4099_s26 + $0xf0] sm:$0xff] %v2438_v42 }
 0x401   : > { %v2905_v31 = vpop.f32.mrb[24].mxu1 }
 0x402   : > { %v2376_v32 = vpop.f32.mrb[25].mxu1  ;;  %v2385_v2 = vadd.f32 %v2905_v31, %v4037_v45 }
 0x403   : > { %v2377_v33 = vadd.f32 %v4037_v45, %v2376_v32  ;;  %v2906_v34 = vpop.f32.mrb[26].mxu1 }
 0x404   : > { %v2379_v6 = vpop.f32.mrb[27].mxu1  ;;  %v2388_v12 = vadd.f32 %v2906_v34, %v4037_v45 }
 0x405   : > { %2447 = vxpose.xlu1.b32.cont [9/16] %v2377_v33, 128  ;;  %v2380_v35 = vadd.f32 %v4037_v45, %v2379_v6 }
 0x409   : > { %2448 = vxpose.xlu1.b32.cont [10/16] %v2380_v35, 128 }
 0x40d   : > { %2449 = vxpose.xlu1.b32.cont [11/16] %v2385_v2, 128 }
 0x411   : > { %2450 = vxpose.xlu1.b32.cont [12/16] %v2388_v12, 128 }
 0x43d   : > { %v2909_v49 = vpop.f32.mrb[28].mxu1 }
 0x43e   : > { %v2392_v51 = vpop.f32.mrb[29].mxu1  ;;  %v2401_v26 = vadd.f32 %v2909_v49, %v4037_v45 }
 0x43f   : > { %v2393_v52 = vadd.f32 %v4037_v45, %v2392_v51  ;;  %v2910_v53 = vpop.f32.mrb[30].mxu1 }
 0x440   : > { %v2395_v54 = vpop.f32.mrb[31].mxu1  ;;  %v2404_v58 = vadd.f32 %v2910_v53, %v4037_v45 }
 0x441   : > { %2451 = vxpose.xlu1.b32.cont [13/16] %v2393_v52, 128  ;;  %v2396_v56 = vadd.f32 %v4037_v45, %v2395_v54 }
 0x445   : > { %2452 = vxpose.xlu1.b32.cont [14/16] %v2396_v56, 128 }
 0x449   : > { %2453 = vxpose.xlu1.b32.cont [15/16] %v2401_v26, 128 }
 0x44d   : > { %2454 = vxpose.xlu1.b32.end [16/16] %v2404_v58, 128 }
 0x491   : > { %v2455_v43 = vpop.trf.xlu1 }
 0x492   : > { %2472 = vst [vmem:[%s4099_s26 + $0x8] sm:$0xff] %v2455_v43 }
 0x495   : > { %v2456_v59 = vpop.trf.xlu1 }
 0x496   : > { %2474 = vst [vmem:[%s4099_s26 + $0x18] sm:$0xff] %v2456_v59 }
 0x499   : > { %v2457_v60 = vpop.trf.xlu1 }
 0x49a   : > { %2476 = vst [vmem:[%s4099_s26 + $0x28] sm:$0xff] %v2457_v60 }
 0x49d   : > { %v2458_v61 = vpop.trf.xlu1 }
 0x49e   : > { %2478 = vst [vmem:[%s4099_s26 + $0x38] sm:$0xff] %v2458_v61 }
 0x4a1   : > { %v2459_v62 = vpop.trf.xlu1 }
 0x4a2   : > { %2480 = vst [vmem:[%s4099_s26 + $0x48] sm:$0xff] %v2459_v62 }
 0x4a5   : > { %v2460_v45 = vpop.trf.xlu1 }
 0x4a6   : > { %2482 = vst [vmem:[%s4099_s26 + $0x58] sm:$0xff] %v2460_v45 }
 0x4a9   : > { %v2461_v63 = vpop.trf.xlu1 }
 0x4aa   : > { %2484 = vst [vmem:[%s4099_s26 + $0x68] sm:$0xff] %v2461_v63 }
 0x4ad   : > { %v2462_v0 = vpop.trf.xlu1 }
 0x4ae   : > { %2486 = vst [vmem:[%s4099_s26 + $0x78] sm:$0xff] %v2462_v0 }
 0x4b1   : > { %v2463_v1 = vpop.trf.xlu1 }
 0x4b2   : > { %2488 = vst [vmem:[%s4099_s26 + $0x88] sm:$0xff] %v2463_v1 }
 0x4b5   : > { %v2464_v4 = vpop.trf.xlu1 }
 0x4b6   : > { %2490 = vst [vmem:[%s4099_s26 + $0x98] sm:$0xff] %v2464_v4 }
 0x4b9   : > { %v2465_v5 = vpop.trf.xlu1 }
 0x4ba   : > { %2492 = vst [vmem:[%s4099_s26 + $0xa8] sm:$0xff] %v2465_v5 }
 0x4bd   : > { %v2466_v3 = vpop.trf.xlu1 }
 0x4be   : > { %2494 = vst [vmem:[%s4099_s26 + $0xb8] sm:$0xff] %v2466_v3 }
 0x4c1   : > { %v2467_v7 = vpop.trf.xlu1 }
 0x4c2   : > { %2496 = vst [vmem:[%s4099_s26 + $0xc8] sm:$0xff] %v2467_v7 }
 0x4c5   : > { %v2468_v8 = vpop.trf.xlu1 }
 0x4c6   : > { %2498 = vst [vmem:[%s4099_s26 + $0xd8] sm:$0xff] %v2468_v8 }
 0x4c9   : > { %v2469_v9 = vpop.trf.xlu1 }
 0x4ca   : > { %2500 = vst [vmem:[%s4099_s26 + $0xe8] sm:$0xff] %v2469_v9 }
 0x4cd   : > { %v2470_v10 = vpop.trf.xlu1 }
 0x4ce   : > { %2502 = vst [vmem:[%s4099_s26 + $0xf8] sm:$0xff] %v2470_v10 }
 0x4cf PF: > { %s15_s18 = sadd.s32 1, %s2940_s18  }
 0x4d0   : > { %p12_p4 = scmp.ge.s32.totalorder %s15_s18, 4  }
 0x4d2   :  { %14 = sbr.rel (!%p12_p4) target bundleno = 1 (0x1), region = 72 }

</bundles_post_ra>
